<compile_context>
chip_gen: v5e
topology: v5e:2x2
jax: 0.10.0
libtpu: 0.0.40
codegen_flags: <defaults>
</compile_context>

<pallas_src>
import functools

import jax
import jax.numpy as jnp
from jax.experimental import pallas as pl
from jax.experimental.pallas import tpu as pltpu


# ---------------------------------------------------------------------------
# Fused VAE forward kernel (no grid: single invocation, everything in VMEM)
# ---------------------------------------------------------------------------
def vae_kernel(x2_ref, eps_ref,
               enc_wx_ref, enc_wh_ref, enc_b_ref,
               wm_ref, bm_ref, wl_ref, bl_ref,
               dec_wz_ref, dec_wx_ref, dec_wh_ref, dec_b_ref,
               fc_w_ref, fc_b_ref,
               out_ref, mean_ref, logvar_ref,
               h_rows,
               *, T, B):
    f32 = jnp.float32
    H = enc_wh_ref.shape[0]

    def cell(gates, c_prev):
        # PyTorch gate order i, f, g, o.  Two full-vreg EUP chains (sigmoid /
        # tanh over the packed 4H gates) instead of four sliced ones.
        sig = jax.nn.sigmoid(gates)
        th = jnp.tanh(gates)
        i = sig[:, 0 * H:1 * H]
        f = sig[:, 1 * H:2 * H]
        g = th[:, 2 * H:3 * H]
        o = sig[:, 3 * H:4 * H]
        c = f * c_prev + i * g
        h = o * jnp.tanh(c)
        return h, c

    # ---- encoder LSTM: input projection for every timestep in one MXU pass --
    enc_wh = enc_wh_ref[...]                                        # (H, 4H)
    x_proj = (jnp.dot(x2_ref[...], enc_wx_ref[...],
                      preferred_element_type=f32) + enc_b_ref[...])  # (T*B, 4H)
    h = jnp.zeros((B, H), f32)
    c = jnp.zeros((B, H), f32)
    for t in range(T):                                              # unrolled
        gates = x_proj[t * B:(t + 1) * B, :] + jnp.dot(
            h, enc_wh, preferred_element_type=f32)
        h, c = cell(gates, c)

    # ---- latent head + reparameterization ----
    mean = jnp.dot(h, wm_ref[...], preferred_element_type=f32) + bm_ref[...]
    logvar = jnp.dot(h, wl_ref[...], preferred_element_type=f32) + bl_ref[...]
    z = mean + eps_ref[...] * jnp.exp(0.5 * logvar)
    mean_ref[...] = mean
    logvar_ref[...] = logvar

    # ---- autoregressive decoder: D outer steps, each an LSTM over B rows ----
    dec_wx = dec_wx_ref[...]                                        # (D, 4H)
    dec_wh = dec_wh_ref[...]                                        # (H, 4H)
    fc_w = fc_w_ref[...]                                            # (H, Do)
    fc_b = fc_b_ref[...]                                            # (1, Do)
    # z is identical for every decoder step: project it (plus bias) once.
    z_proj = (jnp.dot(z, dec_wz_ref[...], preferred_element_type=f32)
              + dec_b_ref[...])                                     # (B, 4H)

    D = x2_ref.shape[1]            # PyTorch loops over x.shape[2] == input_dim
    prev = None
    out = jnp.zeros((B, fc_w.shape[1]), f32)
    for step in range(D):                                           # unrolled
        # step 0 uses timestep-`step` inputs; later steps feed back the
        # previous decoder output (valid only for input_dim <= 2, as in the
        # PyTorch reference).
        x_part = x2_ref[step * B:(step + 1) * B, :] if prev is None else prev
        gates_x = z_proj + jnp.dot(x_part, dec_wx,
                                   preferred_element_type=f32)      # (B, 4H)
        hd = jnp.zeros((1, H), f32)
        cd = jnp.zeros((1, H), f32)
        for b in range(B):                     # serial recurrence over "seq"=B
            g = gates_x[b:b + 1, :] + jnp.dot(hd, dec_wh,
                                              preferred_element_type=f32)
            hd, cd = cell(g, cd)
            h_rows[b:b + 1, :] = hd
        out = jnp.dot(h_rows[...], fc_w, preferred_element_type=f32) + fc_b
        prev = out

    out_ref[...] = out


# ---------------------------------------------------------------------------
# One-time weight preparation (transposes / splits done outside the forward)
# ---------------------------------------------------------------------------
def prepare_weights(params):
    L = params["wm"].shape[0]
    return {
        "enc_wx_t": params["enc_wih"].T,           # (D, 4H)
        "enc_wh_t": params["enc_whh"].T,           # (H, 4H)
        "enc_b": params["enc_b"],                  # (1, 4H)
        "wm_t": params["wm"].T,                    # (H, L)
        "bm": params["bm"],                        # (1, L)
        "wl_t": params["wl"].T,                    # (H, L)
        "bl": params["bl"],                        # (1, L)
        "dec_wz_t": params["dec_wih"][:, :L].T,    # (L, 4H)  z-part of W_ih
        "dec_wx_t": params["dec_wih"][:, L:].T,    # (D, 4H)  x-part of W_ih
        "dec_wh_t": params["dec_whh"].T,           # (H, 4H)
        "dec_b": params["dec_b"],                  # (1, 4H)
        "fc_w_t": params["fc_w"].T,                # (H, Do)
        "fc_b": params["fc_b"],                    # (1, Do)
    }


# ---------------------------------------------------------------------------
# Full VAE forward (single pallas_call)
# ---------------------------------------------------------------------------
def vae_forward(prep, x, eps):
    x = x.astype(jnp.float32)
    B, T, D = x.shape
    H = prep["enc_wh_t"].shape[0]
    L = prep["wm_t"].shape[1]
    Do = prep["fc_w_t"].shape[1]

    # x2[t*B + b] = x[b, t]: one slab holding every timestep, so the kernel
    # projects all inputs with a single dot and uses static row slices.
    x2 = jnp.transpose(x, (1, 0, 2)).reshape(T * B, D)

    kernel = functools.partial(vae_kernel, T=T, B=B)
    out, mean, logvar = pl.pallas_call(
        kernel,
        out_shape=(jax.ShapeDtypeStruct((B, Do), jnp.float32),
                   jax.ShapeDtypeStruct((B, L), jnp.float32),
                   jax.ShapeDtypeStruct((B, L), jnp.float32)),
        scratch_shapes=[pltpu.VMEM((B, H), jnp.float32)],
    )(x2, eps,
      prep["enc_wx_t"], prep["enc_wh_t"], prep["enc_b"],
      prep["wm_t"], prep["bm"], prep["wl_t"], prep["bl"],
      prep["dec_wz_t"], prep["dec_wx_t"], prep["dec_wh_t"], prep["dec_b"],
      prep["fc_w_t"], prep["fc_b"])

    # restore PyTorch's leading num_layers / unsqueeze(0) dim
    return out[None], mean[None], logvar[None]


# ---------------------------------------------------------------------------
# Pure-JAX reference for validation
# ---------------------------------------------------------------------------
def _lstm_cell_ref(x, h, c, wih, whh, b):
    H = h.shape[-1]
    gates = x @ wih.T + h @ whh.T + b
    i = jax.nn.sigmoid(gates[:, 0 * H:1 * H])
    f = jax.nn.sigmoid(gates[:, 1 * H:2 * H])
    g = jnp.tanh(gates[:, 2 * H:3 * H])
    o = jax.nn.sigmoid(gates[:, 3 * H:4 * H])
    c = f * c + i * g
    h = o * jnp.tanh(c)
    return h, c


def _lstm_ref(x_seq, wih, whh, b, h0, c0):
    def step(carry, x_t):
        h, c = carry
        h, c = _lstm_cell_ref(x_t, h, c, wih, whh, b)
        return (h, c), h
    (h, c), hs = jax.lax.scan(step, (h0, c0), x_seq)
    return h, hs


def vae_forward_ref(params, x, eps):
    x = x.astype(jnp.float32)
    B, T, D = x.shape
    H = params["enc_whh"].shape[1]
    h, _ = _lstm_ref(jnp.transpose(x, (1, 0, 2)),
                     params["enc_wih"], params["enc_whh"], params["enc_b"],
                     jnp.zeros((B, H), jnp.float32),
                     jnp.zeros((B, H), jnp.float32))
    mean = h @ params["wm"].T + params["bm"]
    logvar = h @ params["wl"].T + params["bl"]
    z = mean + eps * jnp.exp(0.5 * logvar)

    prev, out = [], None
    for t in range(D):
        x_part = jnp.concatenate(prev, axis=-1) if prev else x[:, t, :]
        dec_in = jnp.concatenate([z, x_part], axis=-1)
        seq = dec_in[:, None, :]                       # length-B seq, batch 1
        _, hs = _lstm_ref(seq, params["dec_wih"], params["dec_whh"],
                          params["dec_b"],
                          jnp.zeros((1, H), jnp.float32),
                          jnp.zeros((1, H), jnp.float32))
        out = hs[:, 0, :] @ params["fc_w"].T + params["fc_b"]
        prev.append(out)
    return out[None], mean[None], logvar[None]


# ---------------------------------------------------------------------------
# Deterministic parameter init (PyTorch shapes; combined LSTM biases)
# ---------------------------------------------------------------------------
def init_params(key, D, H, L):
    ks = jax.random.split(key, 16)

    def u(k, shape, fan):
        bound = 1.0 / (fan ** 0.5)
        return jax.random.uniform(k, shape, jnp.float32, -bound, bound)

    F = L + D
    return {
        "enc_wih": u(ks[0], (4 * H, D), H),
        "enc_whh": u(ks[1], (4 * H, H), H),
        "enc_b": u(ks[2], (1, 4 * H), H) + u(ks[3], (1, 4 * H), H),
        "wm": u(ks[4], (L, H), H),
        "bm": u(ks[5], (1, L), H),
        "wl": u(ks[6], (L, H), H),
        "bl": u(ks[7], (1, L), H),
        "dec_wih": u(ks[8], (4 * H, F), H),
        "dec_whh": u(ks[9], (4 * H, H), H),
        "dec_b": u(ks[10], (1, 4 * H), H) + u(ks[11], (1, 4 * H), H),
        "fc_w": u(ks[12], (D, H), H),
        "fc_b": u(ks[13], (1, D), H),
    }


if __name__ == "__main__":
    B, T = 4, 8
    input_dim, hidden_dim, latent_dim = 2, 32, 8

    key = jax.random.PRNGKey(0)
    k_x, k_eps, k_p = jax.random.split(key, 3)
    x = jax.random.normal(k_x, (B, T, input_dim), jnp.float32)
    eps = jax.random.normal(k_eps, (B, latent_dim), jnp.float32)
    params = init_params(k_p, input_dim, hidden_dim, latent_dim)
    prep = prepare_weights(params)        # one-time weight prep (hoisted)

    out, mean, logvar = vae_forward(prep, x, eps)
    jax.block_until_ready((out, mean, logvar))

    out_r, mean_r, logvar_r = vae_forward_ref(params, x, eps)
    assert out.shape == (1, B, input_dim)
    assert mean.shape == (1, B, latent_dim) and logvar.shape == (1, B, latent_dim)
    assert bool(jnp.allclose(out, out_r, rtol=1e-4, atol=1e-4))
    assert bool(jnp.allclose(mean, mean_r, rtol=1e-4, atol=1e-4))
    assert bool(jnp.allclose(logvar, logvar_r, rtol=1e-4, atol=1e-4))

    print("KERNEL_OK")
</pallas_src>

<mosaic_0001>
module attributes {stable_mosaic.version = 11 : i64} {
  func.func @vae_kernel(%arg0: memref<32x2xf32, #tpu.memory_space<vmem>>, %arg1: memref<4x8xf32, #tpu.memory_space<vmem>>, %arg2: memref<2x128xf32, #tpu.memory_space<vmem>>, %arg3: memref<32x128xf32, #tpu.memory_space<vmem>>, %arg4: memref<1x128xf32, #tpu.memory_space<vmem>>, %arg5: memref<32x8xf32, #tpu.memory_space<vmem>>, %arg6: memref<1x8xf32, #tpu.memory_space<vmem>>, %arg7: memref<32x8xf32, #tpu.memory_space<vmem>>, %arg8: memref<1x8xf32, #tpu.memory_space<vmem>>, %arg9: memref<8x128xf32, #tpu.memory_space<vmem>>, %arg10: memref<2x128xf32, #tpu.memory_space<vmem>>, %arg11: memref<32x128xf32, #tpu.memory_space<vmem>>, %arg12: memref<1x128xf32, #tpu.memory_space<vmem>>, %arg13: memref<32x2xf32, #tpu.memory_space<vmem>>, %arg14: memref<1x2xf32, #tpu.memory_space<vmem>>, %arg15: memref<4x2xf32, #tpu.memory_space<vmem>>, %arg16: memref<4x8xf32, #tpu.memory_space<vmem>>, %arg17: memref<4x8xf32, #tpu.memory_space<vmem>>, %arg18: memref<4x32xf32, #tpu.memory_space<vmem>>) attributes {dimension_semantics = [], scalar_prefetch = 0 : i64, scratch_operands = 1 : i64, tpu.core_type = #tpu.core_type<tc>} {
    %c0 = arith.constant 0 : index
    %c0_0 = arith.constant 0 : index
    %0 = vector.load %arg3[%c0, %c0_0] : memref<32x128xf32, #tpu.memory_space<vmem>>, vector<32x128xf32>
    %c0_1 = arith.constant 0 : index
    %c0_2 = arith.constant 0 : index
    %1 = vector.load %arg0[%c0_1, %c0_2] : memref<32x2xf32, #tpu.memory_space<vmem>>, vector<32x2xf32>
    %c0_3 = arith.constant 0 : index
    %c0_4 = arith.constant 0 : index
    %2 = vector.load %arg2[%c0_3, %c0_4] : memref<2x128xf32, #tpu.memory_space<vmem>>, vector<2x128xf32>
    %cst = arith.constant dense<0.000000e+00> : vector<32x128xf32>
    %3 = tpu.matmul %1, %2, %cst {dimension_numbers = #tpu.dot_dimension_numbers<[1], [0], [0], [1], [0, 0, 1, 1], [], []>} : vector<32x2xf32>, vector<2x128xf32>, vector<32x128xf32> -> vector<32x128xf32>
    %c0_5 = arith.constant 0 : index
    %c0_6 = arith.constant 0 : index
    %4 = vector.load %arg4[%c0_5, %c0_6] : memref<1x128xf32, #tpu.memory_space<vmem>>, vector<1x128xf32>
    %5 = vector.broadcast %4 : vector<1x128xf32> to vector<32x128xf32>
    %6 = arith.addf %3, %5 : vector<32x128xf32>
    %cst_7 = arith.constant 0.000000e+00 : f32
    %7 = vector.broadcast %cst_7 : f32 to vector<4x32xf32>
    %cst_8 = arith.constant 0.000000e+00 : f32
    %8 = vector.broadcast %cst_8 : f32 to vector<4x32xf32>
    %9 = vector.extract_strided_slice %6 {offsets = [0, 0], sizes = [4, 128], strides = [1, 1]} : vector<32x128xf32> to vector<4x128xf32>
    %cst_9 = arith.constant dense<0.000000e+00> : vector<4x128xf32>
    %10 = tpu.matmul %7, %0, %cst_9 {dimension_numbers = #tpu.dot_dimension_numbers<[1], [0], [0], [1], [0, 0, 1, 1], [], []>} : vector<4x32xf32>, vector<32x128xf32>, vector<4x128xf32> -> vector<4x128xf32>
    %11 = arith.addf %9, %10 : vector<4x128xf32>
    %12 = arith.negf %11 : vector<4x128xf32>
    %13 = math.exp %12 : vector<4x128xf32>
    %cst_10 = arith.constant 1.000000e+00 : f32
    %14 = vector.broadcast %cst_10 : f32 to vector<4x128xf32>
    %15 = arith.addf %14, %13 : vector<4x128xf32>
    %16 = arith.divf %14, %15 : vector<4x128xf32>
    %17 = math.tanh %11 : vector<4x128xf32>
    %18 = vector.extract_strided_slice %16 {offsets = [0, 0], sizes = [4, 32], strides = [1, 1]} : vector<4x128xf32> to vector<4x32xf32>
    %19 = vector.extract_strided_slice %16 {offsets = [0, 32], sizes = [4, 32], strides = [1, 1]} : vector<4x128xf32> to vector<4x32xf32>
    %20 = vector.extract_strided_slice %17 {offsets = [0, 64], sizes = [4, 32], strides = [1, 1]} : vector<4x128xf32> to vector<4x32xf32>
    %21 = vector.extract_strided_slice %16 {offsets = [0, 96], sizes = [4, 32], strides = [1, 1]} : vector<4x128xf32> to vector<4x32xf32>
    %22 = arith.mulf %19, %8 : vector<4x32xf32>
    %23 = arith.mulf %18, %20 : vector<4x32xf32>
    %24 = arith.addf %22, %23 : vector<4x32xf32>
    %25 = math.tanh %24 : vector<4x32xf32>
    %26 = arith.mulf %21, %25 : vector<4x32xf32>
    %27 = vector.extract_strided_slice %6 {offsets = [4, 0], sizes = [4, 128], strides = [1, 1]} : vector<32x128xf32> to vector<4x128xf32>
    %cst_11 = arith.constant dense<0.000000e+00> : vector<4x128xf32>
    %28 = tpu.matmul %26, %0, %cst_11 {dimension_numbers = #tpu.dot_dimension_numbers<[1], [0], [0], [1], [0, 0, 1, 1], [], []>} : vector<4x32xf32>, vector<32x128xf32>, vector<4x128xf32> -> vector<4x128xf32>
    %29 = arith.addf %27, %28 : vector<4x128xf32>
    %30 = arith.negf %29 : vector<4x128xf32>
    %31 = math.exp %30 : vector<4x128xf32>
    %cst_12 = arith.constant 1.000000e+00 : f32
    %32 = vector.broadcast %cst_12 : f32 to vector<4x128xf32>
    %33 = arith.addf %32, %31 : vector<4x128xf32>
    %34 = arith.divf %32, %33 : vector<4x128xf32>
    %35 = math.tanh %29 : vector<4x128xf32>
    %36 = vector.extract_strided_slice %34 {offsets = [0, 0], sizes = [4, 32], strides = [1, 1]} : vector<4x128xf32> to vector<4x32xf32>
    %37 = vector.extract_strided_slice %34 {offsets = [0, 32], sizes = [4, 32], strides = [1, 1]} : vector<4x128xf32> to vector<4x32xf32>
    %38 = vector.extract_strided_slice %35 {offsets = [0, 64], sizes = [4, 32], strides = [1, 1]} : vector<4x128xf32> to vector<4x32xf32>
    %39 = vector.extract_strided_slice %34 {offsets = [0, 96], sizes = [4, 32], strides = [1, 1]} : vector<4x128xf32> to vector<4x32xf32>
    %40 = arith.mulf %37, %24 : vector<4x32xf32>
    %41 = arith.mulf %36, %38 : vector<4x32xf32>
    %42 = arith.addf %40, %41 : vector<4x32xf32>
    %43 = math.tanh %42 : vector<4x32xf32>
    %44 = arith.mulf %39, %43 : vector<4x32xf32>
    %45 = vector.extract_strided_slice %6 {offsets = [8, 0], sizes = [4, 128], strides = [1, 1]} : vector<32x128xf32> to vector<4x128xf32>
    %cst_13 = arith.constant dense<0.000000e+00> : vector<4x128xf32>
    %46 = tpu.matmul %44, %0, %cst_13 {dimension_numbers = #tpu.dot_dimension_numbers<[1], [0], [0], [1], [0, 0, 1, 1], [], []>} : vector<4x32xf32>, vector<32x128xf32>, vector<4x128xf32> -> vector<4x128xf32>
    %47 = arith.addf %45, %46 : vector<4x128xf32>
    %48 = arith.negf %47 : vector<4x128xf32>
    %49 = math.exp %48 : vector<4x128xf32>
    %cst_14 = arith.constant 1.000000e+00 : f32
    %50 = vector.broadcast %cst_14 : f32 to vector<4x128xf32>
    %51 = arith.addf %50, %49 : vector<4x128xf32>
    %52 = arith.divf %50, %51 : vector<4x128xf32>
    %53 = math.tanh %47 : vector<4x128xf32>
    %54 = vector.extract_strided_slice %52 {offsets = [0, 0], sizes = [4, 32], strides = [1, 1]} : vector<4x128xf32> to vector<4x32xf32>
    %55 = vector.extract_strided_slice %52 {offsets = [0, 32], sizes = [4, 32], strides = [1, 1]} : vector<4x128xf32> to vector<4x32xf32>
    %56 = vector.extract_strided_slice %53 {offsets = [0, 64], sizes = [4, 32], strides = [1, 1]} : vector<4x128xf32> to vector<4x32xf32>
    %57 = vector.extract_strided_slice %52 {offsets = [0, 96], sizes = [4, 32], strides = [1, 1]} : vector<4x128xf32> to vector<4x32xf32>
    %58 = arith.mulf %55, %42 : vector<4x32xf32>
    %59 = arith.mulf %54, %56 : vector<4x32xf32>
    %60 = arith.addf %58, %59 : vector<4x32xf32>
    %61 = math.tanh %60 : vector<4x32xf32>
    %62 = arith.mulf %57, %61 : vector<4x32xf32>
    %63 = vector.extract_strided_slice %6 {offsets = [12, 0], sizes = [4, 128], strides = [1, 1]} : vector<32x128xf32> to vector<4x128xf32>
    %cst_15 = arith.constant dense<0.000000e+00> : vector<4x128xf32>
    %64 = tpu.matmul %62, %0, %cst_15 {dimension_numbers = #tpu.dot_dimension_numbers<[1], [0], [0], [1], [0, 0, 1, 1], [], []>} : vector<4x32xf32>, vector<32x128xf32>, vector<4x128xf32> -> vector<4x128xf32>
    %65 = arith.addf %63, %64 : vector<4x128xf32>
    %66 = arith.negf %65 : vector<4x128xf32>
    %67 = math.exp %66 : vector<4x128xf32>
    %cst_16 = arith.constant 1.000000e+00 : f32
    %68 = vector.broadcast %cst_16 : f32 to vector<4x128xf32>
    %69 = arith.addf %68, %67 : vector<4x128xf32>
    %70 = arith.divf %68, %69 : vector<4x128xf32>
    %71 = math.tanh %65 : vector<4x128xf32>
    %72 = vector.extract_strided_slice %70 {offsets = [0, 0], sizes = [4, 32], strides = [1, 1]} : vector<4x128xf32> to vector<4x32xf32>
    %73 = vector.extract_strided_slice %70 {offsets = [0, 32], sizes = [4, 32], strides = [1, 1]} : vector<4x128xf32> to vector<4x32xf32>
    %74 = vector.extract_strided_slice %71 {offsets = [0, 64], sizes = [4, 32], strides = [1, 1]} : vector<4x128xf32> to vector<4x32xf32>
    %75 = vector.extract_strided_slice %70 {offsets = [0, 96], sizes = [4, 32], strides = [1, 1]} : vector<4x128xf32> to vector<4x32xf32>
    %76 = arith.mulf %73, %60 : vector<4x32xf32>
    %77 = arith.mulf %72, %74 : vector<4x32xf32>
    %78 = arith.addf %76, %77 : vector<4x32xf32>
    %79 = math.tanh %78 : vector<4x32xf32>
    %80 = arith.mulf %75, %79 : vector<4x32xf32>
    %81 = vector.extract_strided_slice %6 {offsets = [16, 0], sizes = [4, 128], strides = [1, 1]} : vector<32x128xf32> to vector<4x128xf32>
    %cst_17 = arith.constant dense<0.000000e+00> : vector<4x128xf32>
    %82 = tpu.matmul %80, %0, %cst_17 {dimension_numbers = #tpu.dot_dimension_numbers<[1], [0], [0], [1], [0, 0, 1, 1], [], []>} : vector<4x32xf32>, vector<32x128xf32>, vector<4x128xf32> -> vector<4x128xf32>
    %83 = arith.addf %81, %82 : vector<4x128xf32>
    %84 = arith.negf %83 : vector<4x128xf32>
    %85 = math.exp %84 : vector<4x128xf32>
    %cst_18 = arith.constant 1.000000e+00 : f32
    %86 = vector.broadcast %cst_18 : f32 to vector<4x128xf32>
    %87 = arith.addf %86, %85 : vector<4x128xf32>
    %88 = arith.divf %86, %87 : vector<4x128xf32>
    %89 = math.tanh %83 : vector<4x128xf32>
    %90 = vector.extract_strided_slice %88 {offsets = [0, 0], sizes = [4, 32], strides = [1, 1]} : vector<4x128xf32> to vector<4x32xf32>
    %91 = vector.extract_strided_slice %88 {offsets = [0, 32], sizes = [4, 32], strides = [1, 1]} : vector<4x128xf32> to vector<4x32xf32>
    %92 = vector.extract_strided_slice %89 {offsets = [0, 64], sizes = [4, 32], strides = [1, 1]} : vector<4x128xf32> to vector<4x32xf32>
    %93 = vector.extract_strided_slice %88 {offsets = [0, 96], sizes = [4, 32], strides = [1, 1]} : vector<4x128xf32> to vector<4x32xf32>
    %94 = arith.mulf %91, %78 : vector<4x32xf32>
    %95 = arith.mulf %90, %92 : vector<4x32xf32>
    %96 = arith.addf %94, %95 : vector<4x32xf32>
    %97 = math.tanh %96 : vector<4x32xf32>
    %98 = arith.mulf %93, %97 : vector<4x32xf32>
    %99 = vector.extract_strided_slice %6 {offsets = [20, 0], sizes = [4, 128], strides = [1, 1]} : vector<32x128xf32> to vector<4x128xf32>
    %cst_19 = arith.constant dense<0.000000e+00> : vector<4x128xf32>
    %100 = tpu.matmul %98, %0, %cst_19 {dimension_numbers = #tpu.dot_dimension_numbers<[1], [0], [0], [1], [0, 0, 1, 1], [], []>} : vector<4x32xf32>, vector<32x128xf32>, vector<4x128xf32> -> vector<4x128xf32>
    %101 = arith.addf %99, %100 : vector<4x128xf32>
    %102 = arith.negf %101 : vector<4x128xf32>
    %103 = math.exp %102 : vector<4x128xf32>
    %cst_20 = arith.constant 1.000000e+00 : f32
    %104 = vector.broadcast %cst_20 : f32 to vector<4x128xf32>
    %105 = arith.addf %104, %103 : vector<4x128xf32>
    %106 = arith.divf %104, %105 : vector<4x128xf32>
    %107 = math.tanh %101 : vector<4x128xf32>
    %108 = vector.extract_strided_slice %106 {offsets = [0, 0], sizes = [4, 32], strides = [1, 1]} : vector<4x128xf32> to vector<4x32xf32>
    %109 = vector.extract_strided_slice %106 {offsets = [0, 32], sizes = [4, 32], strides = [1, 1]} : vector<4x128xf32> to vector<4x32xf32>
    %110 = vector.extract_strided_slice %107 {offsets = [0, 64], sizes = [4, 32], strides = [1, 1]} : vector<4x128xf32> to vector<4x32xf32>
    %111 = vector.extract_strided_slice %106 {offsets = [0, 96], sizes = [4, 32], strides = [1, 1]} : vector<4x128xf32> to vector<4x32xf32>
    %112 = arith.mulf %109, %96 : vector<4x32xf32>
    %113 = arith.mulf %108, %110 : vector<4x32xf32>
    %114 = arith.addf %112, %113 : vector<4x32xf32>
    %115 = math.tanh %114 : vector<4x32xf32>
    %116 = arith.mulf %111, %115 : vector<4x32xf32>
    %117 = vector.extract_strided_slice %6 {offsets = [24, 0], sizes = [4, 128], strides = [1, 1]} : vector<32x128xf32> to vector<4x128xf32>
    %cst_21 = arith.constant dense<0.000000e+00> : vector<4x128xf32>
    %118 = tpu.matmul %116, %0, %cst_21 {dimension_numbers = #tpu.dot_dimension_numbers<[1], [0], [0], [1], [0, 0, 1, 1], [], []>} : vector<4x32xf32>, vector<32x128xf32>, vector<4x128xf32> -> vector<4x128xf32>
    %119 = arith.addf %117, %118 : vector<4x128xf32>
    %120 = arith.negf %119 : vector<4x128xf32>
    %121 = math.exp %120 : vector<4x128xf32>
    %cst_22 = arith.constant 1.000000e+00 : f32
    %122 = vector.broadcast %cst_22 : f32 to vector<4x128xf32>
    %123 = arith.addf %122, %121 : vector<4x128xf32>
    %124 = arith.divf %122, %123 : vector<4x128xf32>
    %125 = math.tanh %119 : vector<4x128xf32>
    %126 = vector.extract_strided_slice %124 {offsets = [0, 0], sizes = [4, 32], strides = [1, 1]} : vector<4x128xf32> to vector<4x32xf32>
    %127 = vector.extract_strided_slice %124 {offsets = [0, 32], sizes = [4, 32], strides = [1, 1]} : vector<4x128xf32> to vector<4x32xf32>
    %128 = vector.extract_strided_slice %125 {offsets = [0, 64], sizes = [4, 32], strides = [1, 1]} : vector<4x128xf32> to vector<4x32xf32>
    %129 = vector.extract_strided_slice %124 {offsets = [0, 96], sizes = [4, 32], strides = [1, 1]} : vector<4x128xf32> to vector<4x32xf32>
    %130 = arith.mulf %127, %114 : vector<4x32xf32>
    %131 = arith.mulf %126, %128 : vector<4x32xf32>
    %132 = arith.addf %130, %131 : vector<4x32xf32>
    %133 = math.tanh %132 : vector<4x32xf32>
    %134 = arith.mulf %129, %133 : vector<4x32xf32>
    %135 = vector.extract_strided_slice %6 {offsets = [28, 0], sizes = [4, 128], strides = [1, 1]} : vector<32x128xf32> to vector<4x128xf32>
    %cst_23 = arith.constant dense<0.000000e+00> : vector<4x128xf32>
    %136 = tpu.matmul %134, %0, %cst_23 {dimension_numbers = #tpu.dot_dimension_numbers<[1], [0], [0], [1], [0, 0, 1, 1], [], []>} : vector<4x32xf32>, vector<32x128xf32>, vector<4x128xf32> -> vector<4x128xf32>
    %137 = arith.addf %135, %136 : vector<4x128xf32>
    %138 = arith.negf %137 : vector<4x128xf32>
    %139 = math.exp %138 : vector<4x128xf32>
    %cst_24 = arith.constant 1.000000e+00 : f32
    %140 = vector.broadcast %cst_24 : f32 to vector<4x128xf32>
    %141 = arith.addf %140, %139 : vector<4x128xf32>
    %142 = arith.divf %140, %141 : vector<4x128xf32>
    %143 = math.tanh %137 : vector<4x128xf32>
    %144 = vector.extract_strided_slice %142 {offsets = [0, 0], sizes = [4, 32], strides = [1, 1]} : vector<4x128xf32> to vector<4x32xf32>
    %145 = vector.extract_strided_slice %142 {offsets = [0, 32], sizes = [4, 32], strides = [1, 1]} : vector<4x128xf32> to vector<4x32xf32>
    %146 = vector.extract_strided_slice %143 {offsets = [0, 64], sizes = [4, 32], strides = [1, 1]} : vector<4x128xf32> to vector<4x32xf32>
    %147 = vector.extract_strided_slice %142 {offsets = [0, 96], sizes = [4, 32], strides = [1, 1]} : vector<4x128xf32> to vector<4x32xf32>
    %148 = arith.mulf %145, %132 : vector<4x32xf32>
    %149 = arith.mulf %144, %146 : vector<4x32xf32>
    %150 = arith.addf %148, %149 : vector<4x32xf32>
    %151 = math.tanh %150 : vector<4x32xf32>
    %152 = arith.mulf %147, %151 : vector<4x32xf32>
    %c0_25 = arith.constant 0 : index
    %c0_26 = arith.constant 0 : index
    %153 = vector.load %arg5[%c0_25, %c0_26] : memref<32x8xf32, #tpu.memory_space<vmem>>, vector<32x8xf32>
    %cst_27 = arith.constant dense<0.000000e+00> : vector<4x8xf32>
    %154 = tpu.matmul %152, %153, %cst_27 {dimension_numbers = #tpu.dot_dimension_numbers<[1], [0], [0], [1], [0, 0, 1, 1], [], []>} : vector<4x32xf32>, vector<32x8xf32>, vector<4x8xf32> -> vector<4x8xf32>
    %c0_28 = arith.constant 0 : index
    %c0_29 = arith.constant 0 : index
    %155 = vector.load %arg6[%c0_28, %c0_29] : memref<1x8xf32, #tpu.memory_space<vmem>>, vector<1x8xf32>
    %156 = vector.broadcast %155 : vector<1x8xf32> to vector<4x8xf32>
    %157 = arith.addf %154, %156 : vector<4x8xf32>
    %c0_30 = arith.constant 0 : index
    %c0_31 = arith.constant 0 : index
    %158 = vector.load %arg7[%c0_30, %c0_31] : memref<32x8xf32, #tpu.memory_space<vmem>>, vector<32x8xf32>
    %cst_32 = arith.constant dense<0.000000e+00> : vector<4x8xf32>
    %159 = tpu.matmul %152, %158, %cst_32 {dimension_numbers = #tpu.dot_dimension_numbers<[1], [0], [0], [1], [0, 0, 1, 1], [], []>} : vector<4x32xf32>, vector<32x8xf32>, vector<4x8xf32> -> vector<4x8xf32>
    %c0_33 = arith.constant 0 : index
    %c0_34 = arith.constant 0 : index
    %160 = vector.load %arg8[%c0_33, %c0_34] : memref<1x8xf32, #tpu.memory_space<vmem>>, vector<1x8xf32>
    %161 = vector.broadcast %160 : vector<1x8xf32> to vector<4x8xf32>
    %162 = arith.addf %159, %161 : vector<4x8xf32>
    %c0_35 = arith.constant 0 : index
    %c0_36 = arith.constant 0 : index
    %163 = vector.load %arg1[%c0_35, %c0_36] : memref<4x8xf32, #tpu.memory_space<vmem>>, vector<4x8xf32>
    %cst_37 = arith.constant 5.000000e-01 : f32
    %164 = vector.broadcast %cst_37 : f32 to vector<4x8xf32>
    %165 = arith.mulf %164, %162 : vector<4x8xf32>
    %166 = math.exp %165 : vector<4x8xf32>
    %167 = arith.mulf %163, %166 : vector<4x8xf32>
    %168 = arith.addf %157, %167 : vector<4x8xf32>
    %c0_38 = arith.constant 0 : index
    %c0_39 = arith.constant 0 : index
    %169 = vector.load %arg16[%c0_38, %c0_39] : memref<4x8xf32, #tpu.memory_space<vmem>>, vector<4x8xf32>
    tpu.vector_store %arg16[%c0_38, %c0_39], %157 {strides = array<i32>} : memref<4x8xf32, #tpu.memory_space<vmem>>, vector<4x8xf32>,
    %c0_40 = arith.constant 0 : index
    %c0_41 = arith.constant 0 : index
    %170 = vector.load %arg17[%c0_40, %c0_41] : memref<4x8xf32, #tpu.memory_space<vmem>>, vector<4x8xf32>
    tpu.vector_store %arg17[%c0_40, %c0_41], %162 {strides = array<i32>} : memref<4x8xf32, #tpu.memory_space<vmem>>, vector<4x8xf32>,
    %c0_42 = arith.constant 0 : index
    %c0_43 = arith.constant 0 : index
    %171 = vector.load %arg10[%c0_42, %c0_43] : memref<2x128xf32, #tpu.memory_space<vmem>>, vector<2x128xf32>
    %c0_44 = arith.constant 0 : index
    %c0_45 = arith.constant 0 : index
    %172 = vector.load %arg11[%c0_44, %c0_45] : memref<32x128xf32, #tpu.memory_space<vmem>>, vector<32x128xf32>
    %c0_46 = arith.constant 0 : index
    %c0_47 = arith.constant 0 : index
    %173 = vector.load %arg13[%c0_46, %c0_47] : memref<32x2xf32, #tpu.memory_space<vmem>>, vector<32x2xf32>
    %c0_48 = arith.constant 0 : index
    %c0_49 = arith.constant 0 : index
    %174 = vector.load %arg14[%c0_48, %c0_49] : memref<1x2xf32, #tpu.memory_space<vmem>>, vector<1x2xf32>
    %c0_50 = arith.constant 0 : index
    %c0_51 = arith.constant 0 : index
    %175 = vector.load %arg9[%c0_50, %c0_51] : memref<8x128xf32, #tpu.memory_space<vmem>>, vector<8x128xf32>
    %cst_52 = arith.constant dense<0.000000e+00> : vector<4x128xf32>
    %176 = tpu.matmul %168, %175, %cst_52 {dimension_numbers = #tpu.dot_dimension_numbers<[1], [0], [0], [1], [0, 0, 1, 1], [], []>} : vector<4x8xf32>, vector<8x128xf32>, vector<4x128xf32> -> vector<4x128xf32>
    %c0_53 = arith.constant 0 : index
    %c0_54 = arith.constant 0 : index
    %177 = vector.load %arg12[%c0_53, %c0_54] : memref<1x128xf32, #tpu.memory_space<vmem>>, vector<1x128xf32>
    %178 = vector.broadcast %177 : vector<1x128xf32> to vector<4x128xf32>
    %179 = arith.addf %176, %178 : vector<4x128xf32>
    %c0_55 = arith.constant 0 : index
    %c0_56 = arith.constant 0 : index
    %180 = vector.load %arg0[%c0_55, %c0_56] : memref<32x2xf32, #tpu.memory_space<vmem>>, vector<4x2xf32>
    %cst_57 = arith.constant dense<0.000000e+00> : vector<4x128xf32>
    %181 = tpu.matmul %180, %171, %cst_57 {dimension_numbers = #tpu.dot_dimension_numbers<[1], [0], [0], [1], [0, 0, 1, 1], [], []>} : vector<4x2xf32>, vector<2x128xf32>, vector<4x128xf32> -> vector<4x128xf32>
    %182 = arith.addf %179, %181 : vector<4x128xf32>
    %cst_58 = arith.constant 0.000000e+00 : f32
    %183 = vector.broadcast %cst_58 : f32 to vector<1x32xf32>
    %cst_59 = arith.constant 0.000000e+00 : f32
    %184 = vector.broadcast %cst_59 : f32 to vector<1x32xf32>
    %185 = vector.extract_strided_slice %182 {offsets = [0, 0], sizes = [1, 128], strides = [1, 1]} : vector<4x128xf32> to vector<1x128xf32>
    %cst_60 = arith.constant dense<0.000000e+00> : vector<1x128xf32>
    %186 = tpu.matmul %183, %172, %cst_60 {dimension_numbers = #tpu.dot_dimension_numbers<[1], [0], [0], [1], [0, 0, 1, 1], [], []>} : vector<1x32xf32>, vector<32x128xf32>, vector<1x128xf32> -> vector<1x128xf32>
    %187 = arith.addf %185, %186 : vector<1x128xf32>
    %188 = arith.negf %187 : vector<1x128xf32>
    %189 = math.exp %188 : vector<1x128xf32>
    %cst_61 = arith.constant 1.000000e+00 : f32
    %190 = vector.broadcast %cst_61 : f32 to vector<1x128xf32>
    %191 = arith.addf %190, %189 : vector<1x128xf32>
    %192 = arith.divf %190, %191 : vector<1x128xf32>
    %193 = math.tanh %187 : vector<1x128xf32>
    %194 = vector.extract_strided_slice %192 {offsets = [0, 0], sizes = [1, 32], strides = [1, 1]} : vector<1x128xf32> to vector<1x32xf32>
    %195 = vector.extract_strided_slice %192 {offsets = [0, 32], sizes = [1, 32], strides = [1, 1]} : vector<1x128xf32> to vector<1x32xf32>
    %196 = vector.extract_strided_slice %193 {offsets = [0, 64], sizes = [1, 32], strides = [1, 1]} : vector<1x128xf32> to vector<1x32xf32>
    %197 = vector.extract_strided_slice %192 {offsets = [0, 96], sizes = [1, 32], strides = [1, 1]} : vector<1x128xf32> to vector<1x32xf32>
    %198 = arith.mulf %195, %184 : vector<1x32xf32>
    %199 = arith.mulf %194, %196 : vector<1x32xf32>
    %200 = arith.addf %198, %199 : vector<1x32xf32>
    %201 = math.tanh %200 : vector<1x32xf32>
    %202 = arith.mulf %197, %201 : vector<1x32xf32>
    %c0_62 = arith.constant 0 : index
    %c0_63 = arith.constant 0 : index
    %203 = vector.load %arg18[%c0_62, %c0_63] : memref<4x32xf32, #tpu.memory_space<vmem>>, vector<1x32xf32>
    tpu.vector_store %arg18[%c0_62, %c0_63], %202 {strides = array<i32>} : memref<4x32xf32, #tpu.memory_space<vmem>>, vector<1x32xf32>,
    %204 = vector.extract_strided_slice %182 {offsets = [1, 0], sizes = [1, 128], strides = [1, 1]} : vector<4x128xf32> to vector<1x128xf32>
    %cst_64 = arith.constant dense<0.000000e+00> : vector<1x128xf32>
    %205 = tpu.matmul %202, %172, %cst_64 {dimension_numbers = #tpu.dot_dimension_numbers<[1], [0], [0], [1], [0, 0, 1, 1], [], []>} : vector<1x32xf32>, vector<32x128xf32>, vector<1x128xf32> -> vector<1x128xf32>
    %206 = arith.addf %204, %205 : vector<1x128xf32>
    %207 = arith.negf %206 : vector<1x128xf32>
    %208 = math.exp %207 : vector<1x128xf32>
    %cst_65 = arith.constant 1.000000e+00 : f32
    %209 = vector.broadcast %cst_65 : f32 to vector<1x128xf32>
    %210 = arith.addf %209, %208 : vector<1x128xf32>
    %211 = arith.divf %209, %210 : vector<1x128xf32>
    %212 = math.tanh %206 : vector<1x128xf32>
    %213 = vector.extract_strided_slice %211 {offsets = [0, 0], sizes = [1, 32], strides = [1, 1]} : vector<1x128xf32> to vector<1x32xf32>
    %214 = vector.extract_strided_slice %211 {offsets = [0, 32], sizes = [1, 32], strides = [1, 1]} : vector<1x128xf32> to vector<1x32xf32>
    %215 = vector.extract_strided_slice %212 {offsets = [0, 64], sizes = [1, 32], strides = [1, 1]} : vector<1x128xf32> to vector<1x32xf32>
    %216 = vector.extract_strided_slice %211 {offsets = [0, 96], sizes = [1, 32], strides = [1, 1]} : vector<1x128xf32> to vector<1x32xf32>
    %217 = arith.mulf %214, %200 : vector<1x32xf32>
    %218 = arith.mulf %213, %215 : vector<1x32xf32>
    %219 = arith.addf %217, %218 : vector<1x32xf32>
    %220 = math.tanh %219 : vector<1x32xf32>
    %221 = arith.mulf %216, %220 : vector<1x32xf32>
    %c1 = arith.constant 1 : index
    %c0_66 = arith.constant 0 : index
    %222 = vector.load %arg18[%c1, %c0_66] : memref<4x32xf32, #tpu.memory_space<vmem>>, vector<1x32xf32>
    tpu.vector_store %arg18[%c1, %c0_66], %221 {strides = array<i32>} : memref<4x32xf32, #tpu.memory_space<vmem>>, vector<1x32xf32>,
    %223 = vector.extract_strided_slice %182 {offsets = [2, 0], sizes = [1, 128], strides = [1, 1]} : vector<4x128xf32> to vector<1x128xf32>
    %cst_67 = arith.constant dense<0.000000e+00> : vector<1x128xf32>
    %224 = tpu.matmul %221, %172, %cst_67 {dimension_numbers = #tpu.dot_dimension_numbers<[1], [0], [0], [1], [0, 0, 1, 1], [], []>} : vector<1x32xf32>, vector<32x128xf32>, vector<1x128xf32> -> vector<1x128xf32>
    %225 = arith.addf %223, %224 : vector<1x128xf32>
    %226 = arith.negf %225 : vector<1x128xf32>
    %227 = math.exp %226 : vector<1x128xf32>
    %cst_68 = arith.constant 1.000000e+00 : f32
    %228 = vector.broadcast %cst_68 : f32 to vector<1x128xf32>
    %229 = arith.addf %228, %227 : vector<1x128xf32>
    %230 = arith.divf %228, %229 : vector<1x128xf32>
    %231 = math.tanh %225 : vector<1x128xf32>
    %232 = vector.extract_strided_slice %230 {offsets = [0, 0], sizes = [1, 32], strides = [1, 1]} : vector<1x128xf32> to vector<1x32xf32>
    %233 = vector.extract_strided_slice %230 {offsets = [0, 32], sizes = [1, 32], strides = [1, 1]} : vector<1x128xf32> to vector<1x32xf32>
    %234 = vector.extract_strided_slice %231 {offsets = [0, 64], sizes = [1, 32], strides = [1, 1]} : vector<1x128xf32> to vector<1x32xf32>
    %235 = vector.extract_strided_slice %230 {offsets = [0, 96], sizes = [1, 32], strides = [1, 1]} : vector<1x128xf32> to vector<1x32xf32>
    %236 = arith.mulf %233, %219 : vector<1x32xf32>
    %237 = arith.mulf %232, %234 : vector<1x32xf32>
    %238 = arith.addf %236, %237 : vector<1x32xf32>
    %239 = math.tanh %238 : vector<1x32xf32>
    %240 = arith.mulf %235, %239 : vector<1x32xf32>
    %c2 = arith.constant 2 : index
    %c0_69 = arith.constant 0 : index
    %241 = vector.load %arg18[%c2, %c0_69] : memref<4x32xf32, #tpu.memory_space<vmem>>, vector<1x32xf32>
    tpu.vector_store %arg18[%c2, %c0_69], %240 {strides = array<i32>} : memref<4x32xf32, #tpu.memory_space<vmem>>, vector<1x32xf32>,
    %242 = vector.extract_strided_slice %182 {offsets = [3, 0], sizes = [1, 128], strides = [1, 1]} : vector<4x128xf32> to vector<1x128xf32>
    %cst_70 = arith.constant dense<0.000000e+00> : vector<1x128xf32>
    %243 = tpu.matmul %240, %172, %cst_70 {dimension_numbers = #tpu.dot_dimension_numbers<[1], [0], [0], [1], [0, 0, 1, 1], [], []>} : vector<1x32xf32>, vector<32x128xf32>, vector<1x128xf32> -> vector<1x128xf32>
    %244 = arith.addf %242, %243 : vector<1x128xf32>
    %245 = arith.negf %244 : vector<1x128xf32>
    %246 = math.exp %245 : vector<1x128xf32>
    %cst_71 = arith.constant 1.000000e+00 : f32
    %247 = vector.broadcast %cst_71 : f32 to vector<1x128xf32>
    %248 = arith.addf %247, %246 : vector<1x128xf32>
    %249 = arith.divf %247, %248 : vector<1x128xf32>
    %250 = math.tanh %244 : vector<1x128xf32>
    %251 = vector.extract_strided_slice %249 {offsets = [0, 0], sizes = [1, 32], strides = [1, 1]} : vector<1x128xf32> to vector<1x32xf32>
    %252 = vector.extract_strided_slice %249 {offsets = [0, 32], sizes = [1, 32], strides = [1, 1]} : vector<1x128xf32> to vector<1x32xf32>
    %253 = vector.extract_strided_slice %250 {offsets = [0, 64], sizes = [1, 32], strides = [1, 1]} : vector<1x128xf32> to vector<1x32xf32>
    %254 = vector.extract_strided_slice %249 {offsets = [0, 96], sizes = [1, 32], strides = [1, 1]} : vector<1x128xf32> to vector<1x32xf32>
    %255 = arith.mulf %252, %238 : vector<1x32xf32>
    %256 = arith.mulf %251, %253 : vector<1x32xf32>
    %257 = arith.addf %255, %256 : vector<1x32xf32>
    %258 = math.tanh %257 : vector<1x32xf32>
    %259 = arith.mulf %254, %258 : vector<1x32xf32>
    %c3 = arith.constant 3 : index
    %c0_72 = arith.constant 0 : index
    %260 = vector.load %arg18[%c3, %c0_72] : memref<4x32xf32, #tpu.memory_space<vmem>>, vector<1x32xf32>
    tpu.vector_store %arg18[%c3, %c0_72], %259 {strides = array<i32>} : memref<4x32xf32, #tpu.memory_space<vmem>>, vector<1x32xf32>,
    %c0_73 = arith.constant 0 : index
    %c0_74 = arith.constant 0 : index
    %261 = vector.load %arg18[%c0_73, %c0_74] : memref<4x32xf32, #tpu.memory_space<vmem>>, vector<4x32xf32>
    %cst_75 = arith.constant dense<0.000000e+00> : vector<4x2xf32>
    %262 = tpu.matmul %261, %173, %cst_75 {dimension_numbers = #tpu.dot_dimension_numbers<[1], [0], [0], [1], [0, 0, 1, 1], [], []>} : vector<4x32xf32>, vector<32x2xf32>, vector<4x2xf32> -> vector<4x2xf32>
    %263 = vector.broadcast %174 : vector<1x2xf32> to vector<4x2xf32>
    %264 = arith.addf %262, %263 : vector<4x2xf32>
    %cst_76 = arith.constant dense<0.000000e+00> : vector<4x128xf32>
    %265 = tpu.matmul %264, %171, %cst_76 {dimension_numbers = #tpu.dot_dimension_numbers<[1], [0], [0], [1], [0, 0, 1, 1], [], []>} : vector<4x2xf32>, vector<2x128xf32>, vector<4x128xf32> -> vector<4x128xf32>
    %266 = arith.addf %179, %265 : vector<4x128xf32>
    %cst_77 = arith.constant 0.000000e+00 : f32
    %267 = vector.broadcast %cst_77 : f32 to vector<1x32xf32>
    %cst_78 = arith.constant 0.000000e+00 : f32
    %268 = vector.broadcast %cst_78 : f32 to vector<1x32xf32>
    %269 = vector.extract_strided_slice %266 {offsets = [0, 0], sizes = [1, 128], strides = [1, 1]} : vector<4x128xf32> to vector<1x128xf32>
    %cst_79 = arith.constant dense<0.000000e+00> : vector<1x128xf32>
    %270 = tpu.matmul %267, %172, %cst_79 {dimension_numbers = #tpu.dot_dimension_numbers<[1], [0], [0], [1], [0, 0, 1, 1], [], []>} : vector<1x32xf32>, vector<32x128xf32>, vector<1x128xf32> -> vector<1x128xf32>
    %271 = arith.addf %269, %270 : vector<1x128xf32>
    %272 = arith.negf %271 : vector<1x128xf32>
    %273 = math.exp %272 : vector<1x128xf32>
    %cst_80 = arith.constant 1.000000e+00 : f32
    %274 = vector.broadcast %cst_80 : f32 to vector<1x128xf32>
    %275 = arith.addf %274, %273 : vector<1x128xf32>
    %276 = arith.divf %274, %275 : vector<1x128xf32>
    %277 = math.tanh %271 : vector<1x128xf32>
    %278 = vector.extract_strided_slice %276 {offsets = [0, 0], sizes = [1, 32], strides = [1, 1]} : vector<1x128xf32> to vector<1x32xf32>
    %279 = vector.extract_strided_slice %276 {offsets = [0, 32], sizes = [1, 32], strides = [1, 1]} : vector<1x128xf32> to vector<1x32xf32>
    %280 = vector.extract_strided_slice %277 {offsets = [0, 64], sizes = [1, 32], strides = [1, 1]} : vector<1x128xf32> to vector<1x32xf32>
    %281 = vector.extract_strided_slice %276 {offsets = [0, 96], sizes = [1, 32], strides = [1, 1]} : vector<1x128xf32> to vector<1x32xf32>
    %282 = arith.mulf %279, %268 : vector<1x32xf32>
    %283 = arith.mulf %278, %280 : vector<1x32xf32>
    %284 = arith.addf %282, %283 : vector<1x32xf32>
    %285 = math.tanh %284 : vector<1x32xf32>
    %286 = arith.mulf %281, %285 : vector<1x32xf32>
    %c0_81 = arith.constant 0 : index
    %c0_82 = arith.constant 0 : index
    %287 = vector.load %arg18[%c0_81, %c0_82] : memref<4x32xf32, #tpu.memory_space<vmem>>, vector<1x32xf32>
    tpu.vector_store %arg18[%c0_81, %c0_82], %286 {strides = array<i32>} : memref<4x32xf32, #tpu.memory_space<vmem>>, vector<1x32xf32>,
    %288 = vector.extract_strided_slice %266 {offsets = [1, 0], sizes = [1, 128], strides = [1, 1]} : vector<4x128xf32> to vector<1x128xf32>
    %cst_83 = arith.constant dense<0.000000e+00> : vector<1x128xf32>
    %289 = tpu.matmul %286, %172, %cst_83 {dimension_numbers = #tpu.dot_dimension_numbers<[1], [0], [0], [1], [0, 0, 1, 1], [], []>} : vector<1x32xf32>, vector<32x128xf32>, vector<1x128xf32> -> vector<1x128xf32>
    %290 = arith.addf %288, %289 : vector<1x128xf32>
    %291 = arith.negf %290 : vector<1x128xf32>
    %292 = math.exp %291 : vector<1x128xf32>
    %cst_84 = arith.constant 1.000000e+00 : f32
    %293 = vector.broadcast %cst_84 : f32 to vector<1x128xf32>
    %294 = arith.addf %293, %292 : vector<1x128xf32>
    %295 = arith.divf %293, %294 : vector<1x128xf32>
    %296 = math.tanh %290 : vector<1x128xf32>
    %297 = vector.extract_strided_slice %295 {offsets = [0, 0], sizes = [1, 32], strides = [1, 1]} : vector<1x128xf32> to vector<1x32xf32>
    %298 = vector.extract_strided_slice %295 {offsets = [0, 32], sizes = [1, 32], strides = [1, 1]} : vector<1x128xf32> to vector<1x32xf32>
    %299 = vector.extract_strided_slice %296 {offsets = [0, 64], sizes = [1, 32], strides = [1, 1]} : vector<1x128xf32> to vector<1x32xf32>
    %300 = vector.extract_strided_slice %295 {offsets = [0, 96], sizes = [1, 32], strides = [1, 1]} : vector<1x128xf32> to vector<1x32xf32>
    %301 = arith.mulf %298, %284 : vector<1x32xf32>
    %302 = arith.mulf %297, %299 : vector<1x32xf32>
    %303 = arith.addf %301, %302 : vector<1x32xf32>
    %304 = math.tanh %303 : vector<1x32xf32>
    %305 = arith.mulf %300, %304 : vector<1x32xf32>
    %c1_85 = arith.constant 1 : index
    %c0_86 = arith.constant 0 : index
    %306 = vector.load %arg18[%c1_85, %c0_86] : memref<4x32xf32, #tpu.memory_space<vmem>>, vector<1x32xf32>
    tpu.vector_store %arg18[%c1_85, %c0_86], %305 {strides = array<i32>} : memref<4x32xf32, #tpu.memory_space<vmem>>, vector<1x32xf32>,
    %307 = vector.extract_strided_slice %266 {offsets = [2, 0], sizes = [1, 128], strides = [1, 1]} : vector<4x128xf32> to vector<1x128xf32>
    %cst_87 = arith.constant dense<0.000000e+00> : vector<1x128xf32>
    %308 = tpu.matmul %305, %172, %cst_87 {dimension_numbers = #tpu.dot_dimension_numbers<[1], [0], [0], [1], [0, 0, 1, 1], [], []>} : vector<1x32xf32>, vector<32x128xf32>, vector<1x128xf32> -> vector<1x128xf32>
    %309 = arith.addf %307, %308 : vector<1x128xf32>
    %310 = arith.negf %309 : vector<1x128xf32>
    %311 = math.exp %310 : vector<1x128xf32>
    %cst_88 = arith.constant 1.000000e+00 : f32
    %312 = vector.broadcast %cst_88 : f32 to vector<1x128xf32>
    %313 = arith.addf %312, %311 : vector<1x128xf32>
    %314 = arith.divf %312, %313 : vector<1x128xf32>
    %315 = math.tanh %309 : vector<1x128xf32>
    %316 = vector.extract_strided_slice %314 {offsets = [0, 0], sizes = [1, 32], strides = [1, 1]} : vector<1x128xf32> to vector<1x32xf32>
    %317 = vector.extract_strided_slice %314 {offsets = [0, 32], sizes = [1, 32], strides = [1, 1]} : vector<1x128xf32> to vector<1x32xf32>
    %318 = vector.extract_strided_slice %315 {offsets = [0, 64], sizes = [1, 32], strides = [1, 1]} : vector<1x128xf32> to vector<1x32xf32>
    %319 = vector.extract_strided_slice %314 {offsets = [0, 96], sizes = [1, 32], strides = [1, 1]} : vector<1x128xf32> to vector<1x32xf32>
    %320 = arith.mulf %317, %303 : vector<1x32xf32>
    %321 = arith.mulf %316, %318 : vector<1x32xf32>
    %322 = arith.addf %320, %321 : vector<1x32xf32>
    %323 = math.tanh %322 : vector<1x32xf32>
    %324 = arith.mulf %319, %323 : vector<1x32xf32>
    %c2_89 = arith.constant 2 : index
    %c0_90 = arith.constant 0 : index
    %325 = vector.load %arg18[%c2_89, %c0_90] : memref<4x32xf32, #tpu.memory_space<vmem>>, vector<1x32xf32>
    tpu.vector_store %arg18[%c2_89, %c0_90], %324 {strides = array<i32>} : memref<4x32xf32, #tpu.memory_space<vmem>>, vector<1x32xf32>,
    %326 = vector.extract_strided_slice %266 {offsets = [3, 0], sizes = [1, 128], strides = [1, 1]} : vector<4x128xf32> to vector<1x128xf32>
    %cst_91 = arith.constant dense<0.000000e+00> : vector<1x128xf32>
    %327 = tpu.matmul %324, %172, %cst_91 {dimension_numbers = #tpu.dot_dimension_numbers<[1], [0], [0], [1], [0, 0, 1, 1], [], []>} : vector<1x32xf32>, vector<32x128xf32>, vector<1x128xf32> -> vector<1x128xf32>
    %328 = arith.addf %326, %327 : vector<1x128xf32>
    %329 = arith.negf %328 : vector<1x128xf32>
    %330 = math.exp %329 : vector<1x128xf32>
    %cst_92 = arith.constant 1.000000e+00 : f32
    %331 = vector.broadcast %cst_92 : f32 to vector<1x128xf32>
    %332 = arith.addf %331, %330 : vector<1x128xf32>
    %333 = arith.divf %331, %332 : vector<1x128xf32>
    %334 = math.tanh %328 : vector<1x128xf32>
    %335 = vector.extract_strided_slice %333 {offsets = [0, 0], sizes = [1, 32], strides = [1, 1]} : vector<1x128xf32> to vector<1x32xf32>
    %336 = vector.extract_strided_slice %333 {offsets = [0, 32], sizes = [1, 32], strides = [1, 1]} : vector<1x128xf32> to vector<1x32xf32>
    %337 = vector.extract_strided_slice %334 {offsets = [0, 64], sizes = [1, 32], strides = [1, 1]} : vector<1x128xf32> to vector<1x32xf32>
    %338 = vector.extract_strided_slice %333 {offsets = [0, 96], sizes = [1, 32], strides = [1, 1]} : vector<1x128xf32> to vector<1x32xf32>
    %339 = arith.mulf %336, %322 : vector<1x32xf32>
    %340 = arith.mulf %335, %337 : vector<1x32xf32>
    %341 = arith.addf %339, %340 : vector<1x32xf32>
    %342 = math.tanh %341 : vector<1x32xf32>
    %343 = arith.mulf %338, %342 : vector<1x32xf32>
    %c3_93 = arith.constant 3 : index
    %c0_94 = arith.constant 0 : index
    %344 = vector.load %arg18[%c3_93, %c0_94] : memref<4x32xf32, #tpu.memory_space<vmem>>, vector<1x32xf32>
    tpu.vector_store %arg18[%c3_93, %c0_94], %343 {strides = array<i32>} : memref<4x32xf32, #tpu.memory_space<vmem>>, vector<1x32xf32>,
    %c0_95 = arith.constant 0 : index
    %c0_96 = arith.constant 0 : index
    %345 = vector.load %arg18[%c0_95, %c0_96] : memref<4x32xf32, #tpu.memory_space<vmem>>, vector<4x32xf32>
    %cst_97 = arith.constant dense<0.000000e+00> : vector<4x2xf32>
    %346 = tpu.matmul %345, %173, %cst_97 {dimension_numbers = #tpu.dot_dimension_numbers<[1], [0], [0], [1], [0, 0, 1, 1], [], []>} : vector<4x32xf32>, vector<32x2xf32>, vector<4x2xf32> -> vector<4x2xf32>
    %347 = vector.broadcast %174 : vector<1x2xf32> to vector<4x2xf32>
    %348 = arith.addf %346, %347 : vector<4x2xf32>
    %c0_98 = arith.constant 0 : index
    %c0_99 = arith.constant 0 : index
    %349 = vector.load %arg15[%c0_98, %c0_99] : memref<4x2xf32, #tpu.memory_space<vmem>>, vector<4x2xf32>
    tpu.vector_store %arg15[%c0_98, %c0_99], %348 {strides = array<i32>} : memref<4x2xf32, #tpu.memory_space<vmem>>, vector<4x2xf32>,
    return
  }
}

</mosaic_0001>

<bundles_post_ra>
// kernel: tpu_custom_call.1
= control target key start
LH: loop header
LB: loop body
LE: loop exit
PB: predicated region body
PF: predicated region fallthrough
CT: control target
= control target key end

     0   :  { %s2103_s0 = inlined_call_operand.vmem [shape: f32[32,2], index: 0, kind: input, shape index: {}]   ;;  %s2104_s1 = inlined_call_operand.vmem [shape: f32[4,8], index: 1, kind: input, shape index: {}]   ;;  %s2105_s2 = inlined_call_operand.vmem [shape: f32[2,128], index: 2, kind: input, shape index: {}]   ;;  %s2106_s3 = inlined_call_operand.vmem [shape: f32[32,128], index: 3, kind: input, shape index: {}]   ;;  %s2107_s4 = inlined_call_operand.vmem [shape: f32[1,128], index: 4, kind: input, shape index: {}]   ;;  %s2108_s5 = inlined_call_operand.vmem [shape: f32[32,8], index: 5, kind: input, shape index: {}]   ;;  %s2109_s6 = inlined_call_operand.vmem [shape: f32[1,8], index: 6, kind: input, shape index: {}]   ;;  %s2110_s7 = inlined_call_operand.vmem [shape: f32[32,8], index: 7, kind: input, shape index: {}]   ;;  %s2111_s8 = inlined_call_operand.vmem [shape: f32[1,8], index: 8, kind: input, shape index: {}]   ;;  %s2112_s9 = inlined_call_operand.vmem [shape: f32[8,128], index: 9, kind: input, shape index: {}]   ;;  %s2113_s10 = inlined_call_operand.vmem [shape: f32[2,128], index: 10, kind: input, shape index: {}]   ;;  %s2114_s11 = inlined_call_operand.vmem [shape: f32[32,128], index: 11, kind: input, shape index: {}]   ;;  %s2115_s12 = inlined_call_operand.vmem [shape: f32[1,128], index: 12, kind: input, shape index: {}]   ;;  %s2116_s13 = inlined_call_operand.vmem [shape: f32[32,2], index: 13, kind: input, shape index: {}]   ;;  %s2117_s14 = inlined_call_operand.vmem [shape: f32[1,2], index: 14, kind: input, shape index: {}]   ;;  %s2118_s15 = inlined_call_operand.vmem [shape: f32[4,2], index: 15, kind: output, shape index: {0}]   ;;  %s2119_s16 = inlined_call_operand.hbm [shape: f32[4,8], index: 16, kind: output, shape index: {1}]   ;;  %s2120_s17 = inlined_call_operand.hbm [shape: f32[4,8], index: 17, kind: output, shape index: {2}]  }
   0x1   :  { %2122 = sst [smem:[#allocation9_spill]] %s2103_s0 }
   0x2   :  { %2123 = sst [smem:[#allocation10_spill]] %s2104_s1 }
   0x3   :  { %23 = vsyncpa [#allocation4], 0  ;;  %v1785_v0 = vld [vmem:[%s2106_s3 + $0x18] sm:$0xff]  ;;  %v1790_v1 = vld [vmem:[%s2106_s3 + $0x10] sm:$0xff]  ;;  %vm81_vm0 = vcmask 1041408   ;;  %vm68_vm1 = vcmask 15360  }
   0x4   :  { %v63_v2 = vld [vmem:[%s2105_s2] sm:$0x3]  ;;  %130 = vmatpush.msra.mxu1 %v1785_v0  ;;  %s2124_s18 = sld [smem:[#allocation9_spill]]  ;;  %v1803_v4 = vld [vmem:[%s2106_s3 + $0x8] sm:$0xff]  ;;  %193 = vmatpush.msra.mxu2 %v1785_v0 }
   0x5   :  { %1452 = vmatpush.msk.msra.mxu0 %vm81_vm0, %v63_v2  ;;  %263 = vmatpush.msra.mxu3 %v1785_v0  ;;  %v1812_v5 = vld [vmem:[%s2106_s3] sm:$0xff] }
   0x6   :  { %131 = vmatpush.msra.mxu1 %v1790_v1  ;;  %194 = vmatpush.msra.mxu2 %v1790_v1 }
   0xa   :  { %v59_v3 = vld [vmem:[%s2124_s18] sm:$0xff] }
   0xb   :  { %1453 = vmatmul.msk.f32.vlgmr.msra.gmra.mxu0 %vm68_vm1, %v59_v3 }
   0xc   :  { %24 = vsyncpa [#allocation6], 0  ;;  %132 = vmatpush.msra.mxu1 %v1803_v4  ;;  %264 = vmatpush.msra.mxu3 %v1790_v1  ;;  %v1687_v6 = vmov 0.0   ;;  %v1842_v7 = vld [vmem:[%s2107_s4] ss:$0 sm:$0xff]  ;;  %s1688_s22 = smov 64  }
   0xd   :  { %195 = vmatpush.msra.mxu2 %v1803_v4  ;;  %s1689_s4 = smov 32   ;;  %vm114_vm6 = vcmask 261120   ;;  %v60_v62 = vld [vmem:[%s2124_s18 + $0x8] sm:$0xff]  ;;  %s2125_s28 = sld [smem:[#allocation10_spill]] }
   0xe   :  { %133 = vmatpush.msra.mxu1 %v1812_v5  ;;  %265 = vmatpush.msra.mxu3 %v1803_v4  ;;  %s1425_s24 = sshll.u32 %s2119_s16, 4  ;;  %s1426_s24 = int_to_ptr.hbm [resolvable:$true] %s1425_s24 }
   0xf   :  { %134 = vmatmul.f32.vlgmr.msra.gmra.mxu1 %v1687_v6  ;;  %196 = vmatpush.msra.mxu2 %v1812_v5 }
  0x10   :  { %266 = vmatpush.msra.mxu3 %v1812_v5  ;;  %329 = vmatpush.msrb.mxu1 %v1785_v0 }
  0x11   :  { %399 = vmatpush.msrb.mxu2 %v1785_v0 }
  0x12   :  { %465 = vmatpush.msrb.mxu3 %v1785_v0  ;;  %330 = vmatpush.msrb.mxu1 %v1790_v1 }
  0x13   :  { %400 = vmatpush.msrb.mxu2 %v1790_v1  ;;  %1454 = vmatmul.msk.f32.gmra.mxu0 %vm68_vm1, %v60_v62 }
  0x14   :  { %466 = vmatpush.msrb.mxu3 %v1790_v1  ;;  %331 = vmatpush.msrb.mxu1 %v1803_v4 }
  0x15   :  { %401 = vmatpush.msrb.mxu2 %v1803_v4 }
  0x16   :  { %467 = vmatpush.msrb.mxu3 %v1803_v4  ;;  %332 = vmatpush.msrb.mxu1 %v1812_v5 }
  0x17   :  { %402 = vmatpush.msrb.mxu2 %v1812_v5 }
  0x18   :  { %468 = vmatpush.msrb.mxu3 %v1812_v5  ;;  %535 = vmatpush.msra.mxu1 %v1785_v0 }
  0x1a   :  { %536 = vmatpush.msra.mxu1 %v1790_v1 }
  0x1c   :  { %537 = vmatpush.msra.mxu1 %v1803_v4 }
  0x1e   :  { %538 = vmatpush.msra.mxu1 %v1812_v5 }
  0x88   :  { %v102_v8 = vpop.f32.mrf.mxu0 }
  0x89   :  { %v103_v9 = vadd.f32 %v1842_v7, %v102_v8 }
  0x8c   :  { %v135_v10 = vpop.f32.mrf.mxu1 }
  0x8d   :  { %v138_v11 = vadd.f32 %v135_v10, %v103_v9 }
  0x8f   :  { %1505 = vtanh.f32 %v138_v11  ;;  %v1457_v13 = vmul.f32 -1.442695, %v138_v11 }
  0x91   :  { %1507 = vpow2.f32 %v1457_v13 }
  0x95   :  { %v1506_v12 = vpop.eup %1505 }
  0x96   :  { %161 = vrot.lane.b32.xlu0 %v1506_v12, %s1688_s22 }
  0x97   :  { %v1508_v14 = vpop.eup %1507 }
  0x98   :  { %v142_v15 = vadd.f32 1.0, %v1508_v14 }
  0x9a   :  { %1509 = vrcp.f32 %v142_v15  ;;  %v154_v21 = vand.u32 2147483648, %v142_v15  ;;  %vm148_vm3 = vweird.f32 %v142_v15  ;;  %v152_v22 = vand.u32 2147483647, %v142_v15 }
  0x9c   :  { %v155_v24 = vor.u32 1.1754944e-38, %v154_v21  ;;  %vm153_vm5 = vcmp.eq.f32.partialorder %v152_v22, 8.507059e+37 }
  0xa0   :  { %v1510_v16 = vpop.eup %1509 }
  0xa1   :  { %v144_v17 = vmul.f32 %v1510_v16, %v142_v15  ;;  %vm149_vm2 = vweird.f32 %v1510_v16 }
  0xa2   :  { %vm150_vm4 = vmor %vm148_vm3, %vm149_vm2 }
  0xa3   :  { %v145_v18 = vsub.f32 1.0, %v144_v17 }
  0xa5   :  { %v146_v19 = vmul.f32 %v1510_v16, %v145_v18 }
  0xa7   :  { %v147_v20 = vadd.f32 %v1510_v16, %v146_v19 }
  0xa9   :  { %v151_v23 = vsel %vm150_vm4, %v1510_v16, %v147_v20 }
  0xaa   :  { %v156_v26 = vsel %vm153_vm5, %v155_v24, %v151_v23 }
  0xab   :  { %v159_v28 = vmul.f32 0.0, %v156_v26 }
 0x108   :  { %v162_v25 = vpop.permute.xlu0 %161 }
 0x109   :  { %v164_v27 = vmul.f32 %v162_v25, %v156_v26 }
 0x10b   :  { %166 = vrot.lane.b32.xlu0 %v164_v27, %s1689_s4 }
 0x17d   :  { %v167_v29 = vpop.permute.xlu0 %166 }
 0x17e   :  { %v169_v30 = vadd.f32 %v167_v29, %v159_v28 }
 0x180   :  { %1511 = vtanh.f32 %v169_v30  ;;  %v226_v54 = vrot.slane %v169_v30, 4 }
 0x186   :  { %v1512_v31 = vpop.eup %1511 }
 0x187   :  { %172 = vrot.lane.b32.xlu1 %v1512_v31, %s1688_s22 }
 0x1f9   :  { %v173_v32 = vpop.permute.xlu1 %172 }
 0x1fa   :  { %v175_v33 = vmul.f32 %v173_v32, %v156_v26 }
 0x1fc   :  { %177 = vrot.lane.b32.xlu1 %v175_v33, %s1689_s4 }
 0x26e   :  { %v178_v34 = vpop.permute.xlu1 %177 }
 0x26f   :  { %1458 = vmatmul.msk.f32.vlgmr.msra.gmra.mxu2 %vm114_vm6, %v178_v34 }
 0x270   :  { %601 = vmatpush.msra.mxu2 %v1785_v0  ;;  %v105_v0 = vpop.f32.mrf.mxu0 }
 0x272   :  { %602 = vmatpush.msra.mxu2 %v1790_v1  ;;  %v106_v1 = vadd.f32 %v1842_v7, %v105_v0 }
 0x274   :  { %603 = vmatpush.msra.mxu2 %v1803_v4 }
 0x276   :  { %604 = vmatpush.msra.mxu2 %v1812_v5 }
 0x2f2   :  { %v198_v35 = vpop.f32.mrf.mxu2 }
 0x2f3   :  { %v202_v36 = vrot.slane %v198_v35, 4 }
 0x2f5   :  { %v204_v37 = vadd.f32 %v202_v36, %v103_v9 }
 0x2f7   :  { %1513 = vtanh.f32 %v204_v37  ;;  %v1459_v39 = vmul.f32 -1.442695, %v204_v37 }
 0x2f9   :  { %1515 = vpow2.f32 %v1459_v39 }
 0x2fd   :  { %v1514_v38 = vpop.eup %1513 }
 0x2fe   :  { %230 = vrot.lane.b32.xlu2 %v1514_v38, %s1688_s22 }
 0x2ff   :  { %v1516_v40 = vpop.eup %1515 }
 0x300   :  { %v208_v41 = vadd.f32 1.0, %v1516_v40 }
 0x302   :  { %1517 = vrcp.f32 %v208_v41  ;;  %v220_v47 = vand.u32 2147483648, %v208_v41  ;;  %vm214_vm8 = vweird.f32 %v208_v41  ;;  %v218_v48 = vand.u32 2147483647, %v208_v41 }
 0x304   :  { %v221_v50 = vor.u32 1.1754944e-38, %v220_v47  ;;  %vm219_vm10 = vcmp.eq.f32.partialorder %v218_v48, 8.507059e+37 }
 0x308   :  { %v1518_v42 = vpop.eup %1517 }
 0x309   :  { %v210_v43 = vmul.f32 %v1518_v42, %v208_v41  ;;  %vm215_vm7 = vweird.f32 %v1518_v42 }
 0x30a   :  { %vm216_vm9 = vmor %vm214_vm8, %vm215_vm7 }
 0x30b   :  { %v211_v44 = vsub.f32 1.0, %v210_v43 }
 0x30d   :  { %v212_v45 = vmul.f32 %v1518_v42, %v211_v44 }
 0x30f   :  { %v213_v46 = vadd.f32 %v1518_v42, %v212_v45 }
 0x311   :  { %v217_v49 = vsel %vm216_vm9, %v1518_v42, %v213_v46 }
 0x312   :  { %v222_v52 = vsel %vm219_vm10, %v221_v50, %v217_v49 }
 0x313   :  { %v228_v55 = vmul.f32 %v226_v54, %v222_v52 }
 0x358   :  { %v231_v51 = vpop.permute.xlu2 %230 }
 0x359   :  { %v233_v53 = vmul.f32 %v231_v51, %v222_v52 }
 0x35b   :  { %235 = vrot.lane.b32.xlu2 %v233_v53, %s1689_s4 }
 0x3b5   :  { %v236_v56 = vpop.permute.xlu2 %235 }
 0x3b6   :  { %v238_v57 = vadd.f32 %v236_v56, %v228_v55 }
 0x3b8   :  { %1519 = vtanh.f32 %v238_v57  ;;  %v293_v22 = vrot.slane %v238_v57, 4  ;;  %v61_v57 = vld [vmem:[%s2124_s18 + $0x10] sm:$0xff] }
 0x3b9   :  { %1455 = vmatmul.msk.f32.gmra.mxu0 %vm68_vm1, %v61_v57 }
 0x3be   :  { %v1520_v58 = vpop.eup %1519 }
 0x3bf   :  { %241 = vrot.lane.b32.xlu0 %v1520_v58, %s1688_s22 }
 0x431   :  { %v242_v59 = vpop.permute.xlu0 %241 }
 0x432   :  { %v244_v60 = vmul.f32 %v242_v59, %v222_v52 }
 0x434   :  { %v246_v61 = vrot.slane %v244_v60, 4 }
 0x436   :  { %247 = vrot.lane.b32.xlu1 %v246_v61, %s1689_s4  ;;  %v108_v59 = vpop.f32.mrf.mxu0 }
 0x437   :  { %v109_v60 = vadd.f32 %v1842_v7, %v108_v59 }
 0x4a8   :  { %v248_v63 = vpop.permute.xlu1 %247 }
 0x4a9   :  { %1460 = vmatmul.msk.f32.vlgmr.msra.gmra.mxu3 %vm114_vm6, %v248_v63 }
 0x52c   :  { %v268_v2 = vpop.f32.mrf.mxu3 }
 0x52d   :  { %v271_v3 = vadd.f32 %v268_v2, %v106_v1 }
 0x52f   :  { %1521 = vtanh.f32 %v271_v3  ;;  %v1461_v5 = vmul.f32 -1.442695, %v271_v3 }
 0x531   :  { %1523 = vpow2.f32 %v1461_v5 }
 0x535   :  { %v1522_v4 = vpop.eup %1521 }
 0x536   :  { %297 = vrot.lane.b32.xlu2 %v1522_v4, %s1688_s22 }
 0x537   :  { %v1524_v8 = vpop.eup %1523 }
 0x538   :  { %v275_v9 = vadd.f32 1.0, %v1524_v8 }
 0x53a   :  { %1525 = vrcp.f32 %v275_v9  ;;  %v287_v15 = vand.u32 2147483648, %v275_v9  ;;  %vm281_vm12 = vweird.f32 %v275_v9  ;;  %v285_v16 = vand.u32 2147483647, %v275_v9 }
 0x53c   :  { %v288_v18 = vor.u32 1.1754944e-38, %v287_v15  ;;  %vm286_vm14 = vcmp.eq.f32.partialorder %v285_v16, 8.507059e+37 }
 0x540   :  { %v1526_v10 = vpop.eup %1525 }
 0x541   :  { %v277_v11 = vmul.f32 %v1526_v10, %v275_v9  ;;  %vm282_vm11 = vweird.f32 %v1526_v10 }
 0x542   :  { %vm283_vm13 = vmor %vm281_vm12, %vm282_vm11 }
 0x543   :  { %v278_v12 = vsub.f32 1.0, %v277_v11 }
 0x545   :  { %v279_v13 = vmul.f32 %v1526_v10, %v278_v12 }
 0x547   :  { %v280_v14 = vadd.f32 %v1526_v10, %v279_v13 }
 0x549   :  { %v284_v17 = vsel %vm283_vm13, %v1526_v10, %v280_v14 }
 0x54a   :  { %v289_v20 = vsel %vm286_vm14, %v288_v18, %v284_v17 }
 0x54b   :  { %v295_v23 = vmul.f32 %v293_v22, %v289_v20 }
 0x590   :  { %v298_v19 = vpop.permute.xlu2 %297 }
 0x591   :  { %v300_v21 = vmul.f32 %v298_v19, %v289_v20 }
 0x593   :  { %302 = vrot.lane.b32.xlu0 %v300_v21, %s1689_s4 }
 0x605   :  { %v303_v24 = vpop.permute.xlu0 %302 }
 0x606   :  { %v305_v25 = vadd.f32 %v303_v24, %v295_v23 }
 0x608   :  { %1527 = vtanh.f32 %v305_v25  ;;  %v362_v49 = vrot.slane %v305_v25, 4 }
 0x60e   :  { %v1528_v26 = vpop.eup %1527 }
 0x60f   :  { %308 = vrot.lane.b32.xlu1 %v1528_v26, %s1688_s22 }
 0x681   :  { %v309_v27 = vpop.permute.xlu1 %308 }
 0x682   :  { %v311_v28 = vmul.f32 %v309_v27, %v289_v20 }
 0x684   :  { %313 = vrot.lane.b32.xlu2 %v311_v28, %s1689_s4 }
 0x6de   :  { %v314_v29 = vpop.permute.xlu2 %313 }
 0x6df   :  { %1462 = vmatmul.msk.f32.vlgmr.msrb.gmra.mxu1 %vm114_vm6, %v314_v29 }
 0x75c   :  { %v334_v30 = vpop.f32.mrf.mxu1 }
 0x75d   :  { %v338_v31 = vrot.slane %v334_v30, 4 }
 0x75f   :  { %v340_v32 = vadd.f32 %v338_v31, %v106_v1 }
 0x761   :  { %1529 = vtanh.f32 %v340_v32  ;;  %v1463_v34 = vmul.f32 -1.442695, %v340_v32 }
 0x763   :  { %1531 = vpow2.f32 %v1463_v34 }
 0x767   :  { %v1530_v33 = vpop.eup %1529 }
 0x768   :  { %366 = vrot.lane.b32.xlu0 %v1530_v33, %s1688_s22 }
 0x769   :  { %v1532_v35 = vpop.eup %1531 }
 0x76a   :  { %v344_v36 = vadd.f32 1.0, %v1532_v35 }
 0x76c   :  { %1533 = vrcp.f32 %v344_v36  ;;  %v356_v42 = vand.u32 2147483648, %v344_v36  ;;  %vm350_vm2 = vweird.f32 %v344_v36  ;;  %v354_v43 = vand.u32 2147483647, %v344_v36 }
 0x76e   :  { %v357_v45 = vor.u32 1.1754944e-38, %v356_v42  ;;  %vm355_vm4 = vcmp.eq.f32.partialorder %v354_v43, 8.507059e+37 }
 0x772   :  { %v1534_v37 = vpop.eup %1533 }
 0x773   :  { %v346_v38 = vmul.f32 %v1534_v37, %v344_v36  ;;  %vm351_vm15 = vweird.f32 %v1534_v37 }
 0x774   :  { %vm352_vm3 = vmor %vm350_vm2, %vm351_vm15 }
 0x775   :  { %v347_v39 = vsub.f32 1.0, %v346_v38 }
 0x777   :  { %v348_v40 = vmul.f32 %v1534_v37, %v347_v39 }
 0x779   :  { %v349_v41 = vadd.f32 %v1534_v37, %v348_v40 }
 0x77b   :  { %v353_v44 = vsel %vm352_vm3, %v1534_v37, %v349_v41 }
 0x77c   :  { %v358_v47 = vsel %vm355_vm4, %v357_v45, %v353_v44 }
 0x77d   :  { %v364_v50 = vmul.f32 %v362_v49, %v358_v47  ;;  %v62_v49 = vld [vmem:[%s2124_s18 + $0x18] sm:$0xff] }
 0x77e   :  { %1456 = vmatmul.msk.f32.gmra.mxu0 %vm68_vm1, %v62_v49  ;;  %v687_v49 = vld [vmem:[%s2110_s7] sm:$0xff] }
 0x7da   :  { %v367_v46 = vpop.permute.xlu0 %366 }
 0x7db   :  { %v369_v48 = vmul.f32 %v367_v46, %v358_v47 }
 0x7dd   :  { %371 = vrot.lane.b32.xlu1 %v369_v48, %s1689_s4 }
 0x84f   :  { %v372_v51 = vpop.permute.xlu1 %371 }
 0x850   :  { %v374_v52 = vadd.f32 %v372_v51, %v364_v50 }
 0x852   :  { %1535 = vtanh.f32 %v374_v52  ;;  %v429_v17 = vrot.slane %v374_v52, 4 }
 0x858   :  { %v1536_v53 = vpop.eup %1535 }
 0x859   :  { %377 = vrot.lane.b32.xlu2 %v1536_v53, %s1688_s22 }
 0x8b3   :  { %v378_v54 = vpop.permute.xlu2 %377 }
 0x8b4   :  { %v380_v55 = vmul.f32 %v378_v54, %v358_v47  ;;  %v111_v54 = vpop.f32.mrf.mxu0 }
 0x8b6   :  { %v382_v56 = vrot.slane %v380_v55, 4  ;;  %v112_v55 = vadd.f32 %v1842_v7, %v111_v54  ;;  %v1930_v54 = vld [vmem:[%s2114_s11 + $0x18] sm:$0xff] }
 0x8b7   :  { %803 = vmatpush.msrb.mxu0 %v1930_v54 }
 0x8b8   :  { %383 = vrot.lane.b32.xlu0 %v382_v56, %s1689_s4 }
 0x92a   :  { %v384_v58 = vpop.permute.xlu0 %383 }
 0x92b   :  { %1464 = vmatmul.msk.f32.vlgmr.msrb.gmra.mxu2 %vm114_vm6, %v384_v58 }
 0x9ae   :  { %v404_v61 = vpop.f32.mrf.mxu2 }
 0x9af   :  { %v407_v62 = vadd.f32 %v404_v61, %v109_v60 }
 0x9b1   :  { %1537 = vtanh.f32 %v407_v62  ;;  %v1465_v0 = vmul.f32 -1.442695, %v407_v62 }
 0x9b3   :  { %1539 = vpow2.f32 %v1465_v0 }
 0x9b7   :  { %v1538_v63 = vpop.eup %1537 }
 0x9b8   :  { %433 = vrot.lane.b32.xlu1 %v1538_v63, %s1688_s22 }
 0x9b9   :  { %v1540_v1 = vpop.eup %1539 }
 0x9ba   :  { %v411_v2 = vadd.f32 1.0, %v1540_v1 }
 0x9bc   :  { %1541 = vrcp.f32 %v411_v2  ;;  %v423_v10 = vand.u32 2147483648, %v411_v2  ;;  %vm417_vm7 = vweird.f32 %v411_v2  ;;  %v421_v11 = vand.u32 2147483647, %v411_v2 }
 0x9be   :  { %v424_v13 = vor.u32 1.1754944e-38, %v423_v10  ;;  %vm422_vm9 = vcmp.eq.f32.partialorder %v421_v11, 8.507059e+37 }
 0x9c2   :  { %v1542_v3 = vpop.eup %1541 }
 0x9c3   :  { %v413_v4 = vmul.f32 %v1542_v3, %v411_v2  ;;  %vm418_vm5 = vweird.f32 %v1542_v3 }
 0x9c4   :  { %vm419_vm8 = vmor %vm417_vm7, %vm418_vm5 }
 0x9c5   :  { %v414_v5 = vsub.f32 1.0, %v413_v4 }
 0x9c7   :  { %v415_v8 = vmul.f32 %v1542_v3, %v414_v5 }
 0x9c9   :  { %v416_v9 = vadd.f32 %v1542_v3, %v415_v8 }
 0x9cb   :  { %v420_v12 = vsel %vm419_vm8, %v1542_v3, %v416_v9 }
 0x9cc   :  { %v425_v15 = vsel %vm422_vm9, %v424_v13, %v420_v12  ;;  %vm739_vm9 = vcmask 64512  }
 0x9cd   :  { %v431_v18 = vmul.f32 %v429_v17, %v425_v15 }
 0xa2a   :  { %v434_v14 = vpop.permute.xlu1 %433 }
 0xa2b   :  { %v436_v16 = vmul.f32 %v434_v14, %v425_v15 }
 0xa2d   :  { %438 = vrot.lane.b32.xlu2 %v436_v16, %s1689_s4 }
 0xa87   :  { %v439_v19 = vpop.permute.xlu2 %438 }
 0xa88   :  { %v441_v20 = vadd.f32 %v439_v19, %v431_v18 }
 0xa8a   :  { %1543 = vtanh.f32 %v441_v20  ;;  %v498_v44 = vrot.slane %v441_v20, 4 }
 0xa90   :  { %v1544_v21 = vpop.eup %1543 }
 0xa91   :  { %444 = vrot.lane.b32.xlu0 %v1544_v21, %s1688_s22 }
 0xb03   :  { %v445_v22 = vpop.permute.xlu0 %444 }
 0xb04   :  { %v447_v23 = vmul.f32 %v445_v22, %v425_v15 }
 0xb06   :  { %449 = vrot.lane.b32.xlu1 %v447_v23, %s1689_s4 }
 0xb78   :  { %v450_v24 = vpop.permute.xlu1 %449 }
 0xb79   :  { %1466 = vmatmul.msk.f32.vlgmr.msrb.gmra.mxu3 %vm114_vm6, %v450_v24 }
 0xbfc   :  { %v470_v25 = vpop.f32.mrf.mxu3 }
 0xbfd   :  { %v474_v26 = vrot.slane %v470_v25, 4 }
 0xbff   :  { %v476_v27 = vadd.f32 %v474_v26, %v109_v60 }
 0xc01   :  { %1545 = vtanh.f32 %v476_v27  ;;  %v1467_v29 = vmul.f32 -1.442695, %v476_v27 }
 0xc03   :  { %1547 = vpow2.f32 %v1467_v29 }
 0xc07   :  { %v1546_v28 = vpop.eup %1545 }
 0xc08   :  { %502 = vrot.lane.b32.xlu2 %v1546_v28, %s1688_s22 }
 0xc09   :  { %v1548_v30 = vpop.eup %1547 }
 0xc0a   :  { %v480_v31 = vadd.f32 1.0, %v1548_v30 }
 0xc0c   :  { %1549 = vrcp.f32 %v480_v31  ;;  %v492_v37 = vand.u32 2147483648, %v480_v31  ;;  %vm486_vm11 = vweird.f32 %v480_v31  ;;  %v490_v38 = vand.u32 2147483647, %v480_v31 }
 0xc0e   :  { %v493_v40 = vor.u32 1.1754944e-38, %v492_v37  ;;  %vm491_vm13 = vcmp.eq.f32.partialorder %v490_v38, 8.507059e+37 }
 0xc12   :  { %v1550_v32 = vpop.eup %1549 }
 0xc13   :  { %v482_v33 = vmul.f32 %v1550_v32, %v480_v31  ;;  %vm487_vm10 = vweird.f32 %v1550_v32 }
 0xc14   :  { %vm488_vm12 = vmor %vm486_vm11, %vm487_vm10 }
 0xc15   :  { %v483_v34 = vsub.f32 1.0, %v482_v33 }
 0xc17   :  { %v484_v35 = vmul.f32 %v1550_v32, %v483_v34 }
 0xc19   :  { %v485_v36 = vadd.f32 %v1550_v32, %v484_v35 }
 0xc1b   :  { %v489_v39 = vsel %vm488_vm12, %v1550_v32, %v485_v36 }
 0xc1c   :  { %v494_v42 = vsel %vm491_vm13, %v493_v40, %v489_v39 }
 0xc1d   :  { %v500_v45 = vmul.f32 %v498_v44, %v494_v42  ;;  %v656_v44 = vld [vmem:[%s2108_s5 + $0x18] sm:$0xff] }
 0xc1e   :  { %679 = vmatpush.msra.mxu3 %v656_v44 }
 0xc62   :  { %v503_v41 = vpop.permute.xlu2 %502 }
 0xc63   :  { %v505_v43 = vmul.f32 %v503_v41, %v494_v42 }
 0xc65   :  { %507 = vrot.lane.b32.xlu0 %v505_v43, %s1689_s4  ;;  %v690_v43 = vld [vmem:[%s2110_s7 + $0x18] sm:$0xff] }
 0xc66   :  { %707 = vmatpush.msrb.mxu1 %v690_v43 }
 0xcd7   :  { %v508_v46 = vpop.permute.xlu0 %507 }
 0xcd8   :  { %v510_v47 = vadd.f32 %v508_v46, %v500_v45  ;;  %v689_v45 = vld [vmem:[%s2110_s7 + $0x10] sm:$0xff] }
 0xcd9   :  { %v655_v46 = vld [vmem:[%s2108_s5 + $0x10] sm:$0xff]  ;;  %708 = vmatpush.msrb.mxu1 %v689_v45 }
 0xcda   :  { %1551 = vtanh.f32 %v510_v47  ;;  %v565_v11 = vrot.slane %v510_v47, 4  ;;  %v688_v47 = vld [vmem:[%s2110_s7 + $0x8] sm:$0xff]  ;;  %680 = vmatpush.msra.mxu3 %v655_v46 }
 0xcdb   :  { %709 = vmatpush.msrb.mxu1 %v688_v47 }
 0xcdd   :  { %710 = vmatpush.msrb.mxu1 %v687_v49 }
 0xce0   :  { %v1552_v48 = vpop.eup %1551 }
 0xce1   :  { %513 = vrot.lane.b32.xlu1 %v1552_v48, %s1688_s22  ;;  %v654_v48 = vld [vmem:[%s2108_s5 + $0x8] sm:$0xff] }
 0xce2   :  { %681 = vmatpush.msra.mxu3 %v654_v48 }
 0xd53   :  { %v514_v50 = vpop.permute.xlu1 %513 }
 0xd54   :  { %v516_v51 = vmul.f32 %v514_v50, %v494_v42  ;;  %v653_v50 = vld [vmem:[%s2108_s5] sm:$0xff] }
 0xd55   :  { %682 = vmatpush.msra.mxu3 %v653_v50 }
 0xd56   :  { %v518_v52 = vrot.slane %v516_v51, 4 }
 0xd58   :  { %519 = vrot.lane.b32.xlu2 %v518_v52, %s1689_s4 }
 0xdb2   :  { %v520_v53 = vpop.permute.xlu2 %519 }
 0xdb3   :  { %1468 = vmatmul.msk.f32.vlgmr.msra.gmra.mxu1 %vm114_vm6, %v520_v53 }
 0xdb4   :  { %869 = vmatpush.msra.mxu1 %v1930_v54 }
 0xe30   :  { %v540_v56 = vpop.f32.mrf.mxu1 }
 0xe31   :  { %v543_v57 = vadd.f32 %v540_v56, %v112_v55  ;;  %v1939_v56 = vld [vmem:[%s2114_s11 + $0x10] sm:$0xff] }
 0xe32   :  { %804 = vmatpush.msrb.mxu0 %v1939_v56  ;;  %870 = vmatpush.msra.mxu1 %v1939_v56 }
 0xe33   :  { %1553 = vtanh.f32 %v543_v57  ;;  %v1469_v59 = vmul.f32 -1.442695, %v543_v57  ;;  %v734_v57 = vld [vmem:[%s2112_s9] sm:$0xff] }
 0xe34   :  { %758 = vmatpush.msrb.mxu2 %v734_v57 }
 0xe35   :  { %1555 = vpow2.f32 %v1469_v59  ;;  %v1952_v59 = vld [vmem:[%s2114_s11 + $0x8] sm:$0xff] }
 0xe36   :  { %805 = vmatpush.msrb.mxu0 %v1952_v59  ;;  %871 = vmatpush.msra.mxu1 %v1952_v59 }
 0xe39   :  { %v1554_v58 = vpop.eup %1553 }
 0xe3a   :  { %569 = vrot.lane.b32.xlu0 %v1554_v58, %s1688_s22  ;;  %v724_v58 = vld [vmem:[%s2113_s10] sm:$0x3] }
 0xe3b   :  { %v1556_v60 = vpop.eup %1555  ;;  %1475 = vmatpush.msk.msrb.mxu3 %vm81_vm0, %v724_v58 }
 0xe3c   :  { %v547_v61 = vadd.f32 1.0, %v1556_v60  ;;  %v763_v60 = vld [vmem:[%s2124_s18] sm:$0xf] }
 0xe3e   :  { %1557 = vrcp.f32 %v547_v61  ;;  %v559_v3 = vand.u32 2147483648, %v547_v61  ;;  %vm553_vm15 = vweird.f32 %v547_v61  ;;  %v557_v7 = vand.u32 2147483647, %v547_v61 }
 0xe40   :  { %v560_v5 = vor.u32 1.1754944e-38, %v559_v3  ;;  %vm558_vm3 = vcmp.eq.f32.partialorder %v557_v7, 8.507059e+37 }
 0xe44   :  { %v1558_v62 = vpop.eup %1557 }
 0xe45   :  { %v549_v63 = vmul.f32 %v1558_v62, %v547_v61  ;;  %vm554_vm14 = vweird.f32 %v1558_v62  ;;  %v1962_v61 = vld [vmem:[%s2114_s11] sm:$0xff] }
 0xe46   :  { %vm555_vm2 = vmor %vm553_vm15, %vm554_vm14  ;;  %806 = vmatpush.msrb.mxu0 %v1962_v61  ;;  %872 = vmatpush.msra.mxu1 %v1962_v61  ;;  %vm853_vm14 = vcmask 253952  }
 0xe47   :  { %v550_v0 = vsub.f32 1.0, %v549_v63  ;;  %807 = vmatmul.f32.vlgmr.msrb.gmra.mxu0 %v1687_v6  ;;  %v1501_v6 = vld [vmem:[%s2111_s8] ss:$0 sm:$0xff] }
 0xe49   :  { %v551_v1 = vmul.f32 %v1558_v62, %v550_v0 }
 0xe4b   :  { %v552_v2 = vadd.f32 %v1558_v62, %v551_v1  ;;  %v1502_v1 = vld [vmem:[%s2109_s6] ss:$0 sm:$0xff] }
 0xe4d   :  { %v556_v4 = vsel %vm555_vm2, %v1558_v62, %v552_v2 }
 0xe4e   :  { %v561_v9 = vsel %vm558_vm3, %v560_v5, %v556_v4  ;;  %v715_v4 = vld [vmem:[%s2125_s28] sm:$0xf] }
 0xe4f   :  { %v567_v12 = vmul.f32 %v565_v11, %v561_v9 }
 0xeac   :  { %v570_v8 = vpop.permute.xlu0 %569 }
 0xead   :  { %v572_v10 = vmul.f32 %v570_v8, %v561_v9 }
 0xeaf   :  { %574 = vrot.lane.b32.xlu1 %v572_v10, %s1689_s4  ;;  %v1503_v10 = vld [vmem:[%s2115_s12] ss:$0 sm:$0xff] }
 0xf21   :  { %v575_v13 = vpop.permute.xlu1 %574 }
 0xf22   :  { %v577_v14 = vadd.f32 %v575_v13, %v567_v12 }
 0xf24   :  { %1559 = vtanh.f32 %v577_v14  ;;  %v634_v38 = vrot.slane %v577_v14, 4  ;;  %v2000_v14 = vpop.f32.mrf.mxu0 }
 0xf2a   :  { %v1560_v15 = vpop.eup %1559 }
 0xf2b   :  { %580 = vrot.lane.b32.xlu2 %v1560_v15, %s1688_s22 }
 0xf85   :  { %v581_v16 = vpop.permute.xlu2 %580 }
 0xf86   :  { %v583_v17 = vmul.f32 %v581_v16, %v561_v9 }
 0xf88   :  { %585 = vrot.lane.b32.xlu0 %v583_v17, %s1689_s4 }
 0xffa   :  { %v586_v18 = vpop.permute.xlu0 %585 }
 0xffb   :  { %1470 = vmatmul.msk.f32.vlgmr.msra.gmra.mxu2 %vm114_vm6, %v586_v18 }
 0xffc   :  { %944 = vmatpush.msra.mxu2 %v1930_v54 }
 0xffe   :  { %945 = vmatpush.msra.mxu2 %v1939_v56 }
0x1000   :  { %946 = vmatpush.msra.mxu2 %v1952_v59 }
0x1002   :  { %947 = vmatpush.msra.mxu2 %v1962_v61 }
0x107e   :  { %v606_v19 = vpop.f32.mrf.mxu2 }
0x107f   :  { %v610_v20 = vrot.slane %v606_v19, 4 }
0x1081   :  { %v612_v21 = vadd.f32 %v610_v20, %v112_v55 }
0x1083   :  { %1561 = vtanh.f32 %v612_v21  ;;  %v1471_v23 = vmul.f32 -1.442695, %v612_v21 }
0x1085   :  { %1563 = vpow2.f32 %v1471_v23 }
0x1089   :  { %v1562_v22 = vpop.eup %1561 }
0x108a   :  { %638 = vrot.lane.b32.xlu1 %v1562_v22, %s1688_s22 }
0x108b   :  { %v1564_v24 = vpop.eup %1563 }
0x108c   :  { %v616_v25 = vadd.f32 1.0, %v1564_v24 }
0x108e   :  { %1565 = vrcp.f32 %v616_v25  ;;  %v628_v31 = vand.u32 2147483648, %v616_v25  ;;  %vm622_vm5 = vweird.f32 %v616_v25  ;;  %v626_v32 = vand.u32 2147483647, %v616_v25 }
0x1090   :  { %v629_v34 = vor.u32 1.1754944e-38, %v628_v31  ;;  %vm627_vm8 = vcmp.eq.f32.partialorder %v626_v32, 8.507059e+37 }
0x1094   :  { %v1566_v26 = vpop.eup %1565 }
0x1095   :  { %v618_v27 = vmul.f32 %v1566_v26, %v616_v25  ;;  %vm623_vm4 = vweird.f32 %v1566_v26 }
0x1096   :  { %vm624_vm7 = vmor %vm622_vm5, %vm623_vm4 }
0x1097   :  { %v619_v28 = vsub.f32 1.0, %v618_v27 }
0x1099   :  { %v620_v29 = vmul.f32 %v1566_v26, %v619_v28 }
0x109b   :  { %v621_v30 = vadd.f32 %v1566_v26, %v620_v29 }
0x109d   :  { %v625_v33 = vsel %vm624_vm7, %v1566_v26, %v621_v30 }
0x109e   :  { %v630_v36 = vsel %vm627_vm8, %v629_v34, %v625_v33 }
0x109f   :  { %v636_v39 = vmul.f32 %v634_v38, %v630_v36 }
0x10fc   :  { %v639_v35 = vpop.permute.xlu1 %638 }
0x10fd   :  { %v641_v37 = vmul.f32 %v639_v35, %v630_v36 }
0x10ff   :  { %643 = vrot.lane.b32.xlu2 %v641_v37, %s1689_s4 }
0x1159   :  { %v644_v40 = vpop.permute.xlu2 %643 }
0x115a   :  { %v646_v41 = vadd.f32 %v644_v40, %v636_v39 }
0x115c   :  { %1567 = vtanh.f32 %v646_v41 }
0x1162   :  { %v1568_v42 = vpop.eup %1567 }
0x1163   :  { %649 = vrot.lane.b32.xlu0 %v1568_v42, %s1688_s22 }
0x11d5   :  { %v650_v51 = vpop.permute.xlu0 %649 }
0x11d6   :  { %v652_v52 = vmul.f32 %v650_v51, %v630_v36 }
0x11d8   :  { %v662_v53 = vrot.slane %v652_v52, 4 }
0x11da   :  { %663 = vrot.lane.b32.xlu1 %v662_v53, %s1689_s4 }
0x124c   :  { %v664_v55 = vpop.permute.xlu1 %663 }
0x124d   :  { %1472 = vmatmul.msk.f32.vlgmr.msra.gmra.mxu3 %vm114_vm6, %v664_v55  ;;  %1473 = vmatmul.msk.f32.vlgmr.msrb.gmra.mxu1 %vm114_vm6, %v664_v55 }
0x124e   :  { %1019 = vmatpush.msra.mxu3 %v1930_v54  ;;  %1485 = vmatpush.msk.msrb.mxu1 %vm81_vm0, %v724_v58  ;;  %vm721_vm0 = vcmask 60416  }
0x1250   :  { %1020 = vmatpush.msra.mxu3 %v1939_v56 }
0x1252   :  { %1021 = vmatpush.msra.mxu3 %v1952_v59 }
0x1254   :  { %1022 = vmatpush.msra.mxu3 %v1962_v61 }
0x1255   :  { %1476 = vmatmul.msk.f32.vlgmr.msrb.gmra.mxu3 %vm68_vm1, %v763_v60 }
0x1256   :  { %1259 = vmatpush.msrb.mxu3 %v1930_v54 }
0x1258   :  { %1260 = vmatpush.msrb.mxu3 %v1939_v56 }
0x125a   :  { %1261 = vmatpush.msrb.mxu3 %v1952_v59 }
0x125c   :  { %1262 = vmatpush.msrb.mxu3 %v1962_v61 }
0x12ca   :  { %v712_v62 = vpop.f32.mrf.mxu1 }
0x12cb   :  { %v713_v63 = vadd.f32 %v1501_v6, %v712_v62 }
0x12cd   :  { %v716_v0 = vmul.f32 0.5, %v713_v63  ;;  %723 = vst.msk [vmem:[#allocation5] sm:$0xf] %vm721_vm0, %v713_v63 }
0x12cf   :  { %v717_v2 = vmul.f32 1.442695, %v716_v0 }
0x12d0   :  { %v684_v3 = vpop.f32.mrf.mxu3 }
0x12d1   :  { %1569 = vpow2.f32 %v717_v2  ;;  %v685_v7 = vadd.f32 %v1502_v1, %v684_v3 }
0x12d3   :  { %722 = vst.msk [vmem:[#allocation3] sm:$0xf] %vm721_vm0, %v685_v7 }
0x12d7   :  { %v1570_v5 = vpop.eup %1569 }
0x12d8   :  { %v719_v8 = vmul.f32 %v1570_v5, %v715_v4  ;;  %v787_v12 = vpop.f32.mrf.mxu3 }
0x12da   :  { %v720_v9 = vadd.f32 %v719_v8, %v685_v7 }
0x12dc   :  { %1474 = vmatmul.msk.f32.vlgmr.msrb.gmra.mxu2 %vm739_vm9, %v720_v9 }
0x12dd   :  { %1185 = vmatpush.msrb.mxu2 %v1930_v54 }
0x12df   :  { %1186 = vmatpush.msrb.mxu2 %v1939_v56 }
0x12e1   :  { %1187 = vmatpush.msrb.mxu2 %v1952_v59 }
0x12e3   :  { %1188 = vmatpush.msrb.mxu2 %v1962_v61 }
0x135f   :  { %v760_v11 = vpop.f32.mrf.mxu2 }
0x1360   :  { %v1998_v13 = vadd.f32 %v1503_v10, %v760_v11 }
0x1362   :  { %v2003_v15 = vadd.f32 %v787_v12, %v1998_v13 }
0x1364   :  { %v811_v16 = vadd.f32 %v2000_v14, %v2003_v15 }
0x1366   :  { %1571 = vtanh.f32 %v811_v16  ;;  %v1477_v18 = vmul.f32 -1.442695, %v811_v16 }
0x1368   :  { %1573 = vpow2.f32 %v1477_v18 }
0x136c   :  { %v1572_v17 = vpop.eup %1571 }
0x136d   :  { %834 = vrot.lane.b32.xlu2 %v1572_v17, %s1688_s22 }
0x136e   :  { %v1574_v19 = vpop.eup %1573 }
0x136f   :  { %v815_v20 = vadd.f32 1.0, %v1574_v19 }
0x1371   :  { %1575 = vrcp.f32 %v815_v20  ;;  %v827_v26 = vand.u32 2147483648, %v815_v20  ;;  %vm821_vm11 = vweird.f32 %v815_v20  ;;  %v825_v27 = vand.u32 2147483647, %v815_v20 }
0x1373   :  { %v828_v29 = vor.u32 1.1754944e-38, %v827_v26  ;;  %vm826_vm13 = vcmp.eq.f32.partialorder %v825_v27, 8.507059e+37 }
0x1377   :  { %v1576_v21 = vpop.eup %1575 }
0x1378   :  { %v817_v22 = vmul.f32 %v1576_v21, %v815_v20  ;;  %vm822_vm10 = vweird.f32 %v1576_v21 }
0x1379   :  { %vm823_vm12 = vmor %vm821_vm11, %vm822_vm10 }
0x137a   :  { %v818_v23 = vsub.f32 1.0, %v817_v22 }
0x137c   :  { %v819_v24 = vmul.f32 %v1576_v21, %v818_v23 }
0x137e   :  { %v820_v25 = vadd.f32 %v1576_v21, %v819_v24 }
0x1380   :  { %v824_v28 = vsel %vm823_vm12, %v1576_v21, %v820_v25 }
0x1381   :  { %v829_v31 = vsel %vm826_vm13, %v828_v29, %v824_v28  ;;  %vm925_vm13 = vcmask 254977  }
0x1382   :  { %v832_v33 = vmul.f32 0.0, %v829_v31 }
0x13c7   :  { %v835_v30 = vpop.permute.xlu2 %834 }
0x13c8   :  { %v837_v32 = vmul.f32 %v835_v30, %v829_v31 }
0x13ca   :  { %839 = vrot.lane.b32.xlu0 %v837_v32, %s1689_s4 }
0x143c   :  { %v840_v34 = vpop.permute.xlu0 %839 }
0x143d   :  { %v842_v35 = vadd.f32 %v840_v34, %v832_v33 }
0x143f   :  { %1577 = vtanh.f32 %v842_v35  ;;  %v902_v62 = vrot.slane %v842_v35, 7 }
0x1445   :  { %v1578_v36 = vpop.eup %1577 }
0x1446   :  { %845 = vrot.lane.b32.xlu1 %v1578_v36, %s1688_s22 }
0x14b8   :  { %v846_v37 = vpop.permute.xlu1 %845 }
0x14b9   :  { %v848_v38 = vmul.f32 %v846_v37, %v829_v31 }
0x14bb   :  { %850 = vrot.lane.b32.xlu2 %v848_v38, %s1689_s4 }
0x1515   :  { %v851_v39 = vpop.permute.xlu2 %850 }
0x1516   :  { %854 = vst.msk [vmem:[#allocation2] sm:$0x1] %vm853_vm14, %v851_v39  ;;  %1478 = vmatmul.msk.f32.vlgmr.msra.gmra.mxu1 %vm114_vm6, %v851_v39 }
0x1593   :  { %v874_v40 = vpop.f32.mrf.mxu1 }
0x1594   :  { %v878_v41 = vrot.slane %v874_v40, 7 }
0x1596   :  { %v880_v42 = vadd.f32 %v878_v41, %v2003_v15 }
0x1598   :  { %1579 = vtanh.f32 %v880_v42  ;;  %v1479_v44 = vmul.f32 -1.442695, %v880_v42 }
0x159a   :  { %1581 = vpow2.f32 %v1479_v44 }
0x159e   :  { %v1580_v43 = vpop.eup %1579 }
0x159f   :  { %906 = vrot.lane.b32.xlu0 %v1580_v43, %s1688_s22 }
0x15a0   :  { %v1582_v45 = vpop.eup %1581 }
0x15a1   :  { %v884_v46 = vadd.f32 1.0, %v1582_v45 }
0x15a3   :  { %1583 = vrcp.f32 %v884_v46  ;;  %v896_v52 = vand.u32 2147483648, %v884_v46  ;;  %vm890_vm2 = vweird.f32 %v884_v46  ;;  %v894_v53 = vand.u32 2147483647, %v884_v46 }
0x15a5   :  { %v897_v57 = vor.u32 1.1754944e-38, %v896_v52  ;;  %vm895_vm4 = vcmp.eq.f32.partialorder %v894_v53, 8.507059e+37 }
0x15a9   :  { %v1584_v47 = vpop.eup %1583 }
0x15aa   :  { %v886_v48 = vmul.f32 %v1584_v47, %v884_v46  ;;  %vm891_vm15 = vweird.f32 %v1584_v47 }
0x15ab   :  { %vm892_vm3 = vmor %vm890_vm2, %vm891_vm15  ;;  %vm1000_vm15 = vcmask 256002   ;;  %vm1075_vm2 = vcmask 257027  }
0x15ac   :  { %v887_v49 = vsub.f32 1.0, %v886_v48 }
0x15ae   :  { %v888_v50 = vmul.f32 %v1584_v47, %v887_v49 }
0x15b0   :  { %v889_v51 = vadd.f32 %v1584_v47, %v888_v50 }
0x15b2   :  { %v893_v55 = vsel %vm892_vm3, %v1584_v47, %v889_v51 }
0x15b3   :  { %v898_v60 = vsel %vm895_vm4, %v897_v57, %v893_v55 }
0x15b4   :  { %v904_v63 = vmul.f32 %v902_v62, %v898_v60 }
0x1611   :  { %v907_v58 = vpop.permute.xlu0 %906 }
0x1612   :  { %v909_v6 = vmul.f32 %v907_v58, %v898_v60 }
0x1614   :  { %911 = vrot.lane.b32.xlu1 %v909_v6, %s1689_s4 }
0x1686   :  { %v912_v0 = vpop.permute.xlu1 %911 }
0x1687   :  { %v914_v1 = vadd.f32 %v912_v0, %v904_v63 }
0x1689   :  { %1585 = vtanh.f32 %v914_v1  ;;  %v977_v30 = vrot.slane %v914_v1, 7 }
0x168f   :  { %v1586_v2 = vpop.eup %1585 }
0x1690   :  { %917 = vrot.lane.b32.xlu2 %v1586_v2, %s1688_s22 }
0x16ea   :  { %v918_v3 = vpop.permute.xlu2 %917 }
0x16eb   :  { %v920_v7 = vmul.f32 %v918_v3, %v898_v60 }
0x16ed   :  { %v927_v4 = vrot.slane %v920_v7, 1 }
0x16ef   :  { %928 = vrot.lane.b32.xlu0 %v927_v4, %s1689_s4  ;;  %v732_v4 = vld [vmem:[%s2116_s13 + $0x18] sm:$0xff] }
0x16f0   :  { %1096 = vmatpush.msra.mxu0 %v732_v4  ;;  %1406 = vmatpush.msra.mxu1 %v732_v4 }
0x1761   :  { %v929_v5 = vpop.permute.xlu0 %928 }
0x1762   :  { %1480 = vmatmul.msk.f32.vlgmr.msra.gmra.mxu2 %vm114_vm6, %v929_v5  ;;  %v731_v5 = vld [vmem:[%s2116_s13 + $0x10] sm:$0xff] }
0x1763   :  { %1097 = vmatpush.msra.mxu0 %v731_v5  ;;  %1407 = vmatpush.msra.mxu1 %v731_v5 }
0x17e5   :  { %v949_v8 = vpop.f32.mrf.mxu2 }
0x17e6   :  { %v953_v9 = vrot.slane %v949_v8, 6  ;;  %v730_v8 = vld [vmem:[%s2116_s13 + $0x8] sm:$0xff] }
0x17e7   :  { %1098 = vmatpush.msra.mxu0 %v730_v8  ;;  %1408 = vmatpush.msra.mxu1 %v730_v8 }
0x17e8   :  { %v955_v10 = vadd.f32 %v953_v9, %v2003_v15  ;;  %v729_v9 = vld [vmem:[%s2116_s13] sm:$0xff] }
0x17e9   :  { %1099 = vmatpush.msra.mxu0 %v729_v9  ;;  %1409 = vmatpush.msra.mxu1 %v729_v9 }
0x17ea   :  { %1587 = vtanh.f32 %v955_v10  ;;  %v1481_v12 = vmul.f32 -1.442695, %v955_v10 }
0x17eb   :  { %1333 = vmatpush.msrb.mxu0 %v1930_v54 }
0x17ec   :  { %1589 = vpow2.f32 %v1481_v12  ;;  %v2055_v12 = vld [vmem:[%s2117_s14] ss:$0 sm:$0xff]  ;;  %s1690_s14 = smov [#allocation3]  }
0x17ed   :  { %1334 = vmatpush.msrb.mxu0 %v1939_v56  ;;  %s1423_s3 = sshll.u32 %s1690_s14, 4  ;;  %s1424_s3 = int_to_ptr.vmem [resolvable:$true] %s1423_s3 }
0x17ee   :  { %1428 = dma.vmem_to_hbm [thread:$0]  %s1424_s3, 64, %s1426_s24, [#allocation4]  }
0x17ef   :  { %1335 = vmatpush.msrb.mxu0 %v1952_v59 }
0x17f0   :  { %v1588_v11 = vpop.eup %1587 }
0x17f1   :  { %981 = vrot.lane.b32.xlu1 %v1588_v11, %s1688_s22  ;;  %1336 = vmatpush.msrb.mxu0 %v1962_v61 }
0x17f2   :  { %v1590_v16 = vpop.eup %1589 }
0x17f3   :  { %v959_v17 = vadd.f32 1.0, %v1590_v16 }
0x17f5   :  { %1591 = vrcp.f32 %v959_v17  ;;  %v971_v23 = vand.u32 2147483648, %v959_v17  ;;  %vm965_vm7 = vweird.f32 %v959_v17  ;;  %v969_v24 = vand.u32 2147483647, %v959_v17 }
0x17f7   :  { %v972_v26 = vor.u32 1.1754944e-38, %v971_v23  ;;  %vm970_vm0 = vcmp.eq.f32.partialorder %v969_v24, 8.507059e+37 }
0x17fb   :  { %v1592_v18 = vpop.eup %1591 }
0x17fc   :  { %v961_v19 = vmul.f32 %v1592_v18, %v959_v17  ;;  %vm966_vm5 = vweird.f32 %v1592_v18 }
0x17fd   :  { %vm967_vm8 = vmor %vm965_vm7, %vm966_vm5 }
0x17fe   :  { %v962_v20 = vsub.f32 1.0, %v961_v19 }
0x1800   :  { %v963_v21 = vmul.f32 %v1592_v18, %v962_v20 }
0x1802   :  { %v964_v22 = vadd.f32 %v1592_v18, %v963_v21 }
0x1804   :  { %v968_v25 = vsel %vm967_vm8, %v1592_v18, %v964_v22 }
0x1805   :  { %v973_v28 = vsel %vm970_vm0, %v972_v26, %v968_v25 }
0x1806   :  { %v979_v31 = vmul.f32 %v977_v30, %v973_v28 }
0x1863   :  { %v982_v27 = vpop.permute.xlu1 %981 }
0x1864   :  { %v984_v29 = vmul.f32 %v982_v27, %v973_v28 }
0x1866   :  { %986 = vrot.lane.b32.xlu2 %v984_v29, %s1689_s4 }
0x18c0   :  { %v987_v32 = vpop.permute.xlu2 %986 }
0x18c1   :  { %v989_v33 = vadd.f32 %v987_v32, %v979_v31 }
0x18c3   :  { %1593 = vtanh.f32 %v989_v33  ;;  %v1052_v6 = vrot.slane %v989_v33, 7 }
0x18c9   :  { %v1594_v34 = vpop.eup %1593 }
0x18ca   :  { %992 = vrot.lane.b32.xlu0 %v1594_v34, %s1688_s22 }
0x193c   :  { %v993_v35 = vpop.permute.xlu0 %992 }
0x193d   :  { %v995_v36 = vmul.f32 %v993_v35, %v973_v28 }
0x193f   :  { %v1002_v37 = vrot.slane %v995_v36, 2 }
0x1941   :  { %1003 = vrot.lane.b32.xlu1 %v1002_v37, %s1689_s4 }
0x19b3   :  { %v1004_v38 = vpop.permute.xlu1 %1003 }
0x19b4   :  { %1482 = vmatmul.msk.f32.vlgmr.msra.gmra.mxu3 %vm114_vm6, %v1004_v38 }
0x1a37   :  { %v1024_v39 = vpop.f32.mrf.mxu3 }
0x1a38   :  { %v1028_v40 = vrot.slane %v1024_v39, 5 }
0x1a3a   :  { %v1030_v41 = vadd.f32 %v1028_v40, %v2003_v15 }
0x1a3c   :  { %1595 = vtanh.f32 %v1030_v41  ;;  %v1483_v43 = vmul.f32 -1.442695, %v1030_v41 }
0x1a3e   :  { %1597 = vpow2.f32 %v1483_v43 }
0x1a42   :  { %v1596_v42 = vpop.eup %1595 }
0x1a43   :  { %1056 = vrot.lane.b32.xlu2 %v1596_v42, %s1688_s22 }
0x1a44   :  { %v1598_v44 = vpop.eup %1597 }
0x1a45   :  { %v1034_v45 = vadd.f32 1.0, %v1598_v44 }
0x1a47   :  { %1599 = vrcp.f32 %v1034_v45  ;;  %v1046_v51 = vand.u32 2147483648, %v1034_v45  ;;  %vm1040_vm10 = vweird.f32 %v1034_v45  ;;  %v1044_v15 = vand.u32 2147483647, %v1034_v45 }
0x1a49   :  { %v1047_v53 = vor.u32 1.1754944e-38, %v1046_v51  ;;  %vm1045_vm12 = vcmp.eq.f32.partialorder %v1044_v15, 8.507059e+37 }
0x1a4b   :  { %922 = vrot.lane.b32.xlu2 %v920_v7, %s1689_s4 }
0x1a4d   :  { %v1600_v46 = vpop.eup %1599 }
0x1a4e   :  { %v1036_v47 = vmul.f32 %v1600_v46, %v1034_v45  ;;  %vm1041_vm9 = vweird.f32 %v1600_v46 }
0x1a4f   :  { %vm1042_vm11 = vmor %vm1040_vm10, %vm1041_vm9 }
0x1a50   :  { %v1037_v48 = vsub.f32 1.0, %v1036_v47 }
0x1a52   :  { %v1038_v49 = vmul.f32 %v1600_v46, %v1037_v48 }
0x1a54   :  { %v1039_v50 = vadd.f32 %v1600_v46, %v1038_v49 }
0x1a56   :  { %v1043_v52 = vsel %vm1042_vm11, %v1600_v46, %v1039_v50 }
0x1a57   :  { %v1048_v57 = vsel %vm1045_vm12, %v1047_v53, %v1043_v52 }
0x1a58   :  { %v1054_v62 = vmul.f32 %v1052_v6, %v1048_v57 }
0x1a9d   :  { %v1057_v55 = vpop.permute.xlu2 %1056 }
0x1a9e   :  { %v1059_v58 = vmul.f32 %v1057_v55, %v1048_v57 }
0x1aa0   :  { %1061 = vrot.lane.b32.xlu0 %v1059_v58, %s1689_s4 }
0x1aa5   :  { %v923_v60 = vpop.permute.xlu2 %922 }
0x1aa6   :  { %926 = vst.msk [vmem:[#allocation2] sm:$0x2] %vm925_vm13, %v923_v60 }
0x1aa8   :  { %997 = vrot.lane.b32.xlu0 %v995_v36, %s1689_s4 }
0x1b12   :  { %v1062_v63 = vpop.permute.xlu0 %1061 }
0x1b13   :  { %v1064_v0 = vadd.f32 %v1062_v63, %v1054_v62 }
0x1b15   :  { %1601 = vtanh.f32 %v1064_v0 }
0x1b1a   :  { %v998_v1 = vpop.permute.xlu0 %997 }
0x1b1b   :  { %v1602_v2 = vpop.eup %1601  ;;  %1001 = vst.msk [vmem:[#allocation2] sm:$0x4] %vm1000_vm15, %v998_v1 }
0x1b1c   :  { %1067 = vrot.lane.b32.xlu1 %v1602_v2, %s1688_s22 }
0x1b8e   :  { %v1068_v3 = vpop.permute.xlu1 %1067 }
0x1b8f   :  { %v1070_v7 = vmul.f32 %v1068_v3, %v1048_v57 }
0x1b91   :  { %1072 = vrot.lane.b32.xlu1 %v1070_v7, %s1689_s4 }
0x1c03   :  { %v1073_v10 = vpop.permute.xlu1 %1072 }
0x1c04   :  { %1076 = vst.msk [vmem:[#allocation2] sm:$0x8] %vm1075_vm2, %v1073_v10 }
0x1c0b   :  { %v1077_v11 = vld [vmem:[#allocation2] sm:$0xf] }
0x1c0c   :  { %1484 = vmatmul.msk.f32.vlgmr.msra.gmra.mxu0 %vm114_vm6, %v1077_v11 }
0x1c89   :  { %v1101_v16 = vpop.f32.mrf.mxu0 }
0x1c8a   :  { %v1102_v54 = vadd.f32 %v2055_v12, %v1101_v16 }
0x1c8c   :  { %1486 = vmatmul.msk.f32.vlgmr.msrb.gmra.mxu1 %vm68_vm1, %v1102_v54 }
0x1d09   :  { %v1124_v56 = vpop.f32.mrf.mxu1 }
0x1d0a   :  { %v2060_v59 = vadd.f32 %v1124_v56, %v1998_v13 }
0x1d0c   :  { %v1128_v61 = vadd.f32 %v2060_v59, %v2000_v14 }
0x1d0e   :  { %1603 = vtanh.f32 %v1128_v61  ;;  %v1487_v18 = vmul.f32 -1.442695, %v1128_v61 }
0x1d10   :  { %1605 = vpow2.f32 %v1487_v18 }
0x1d14   :  { %v1604_v17 = vpop.eup %1603 }
0x1d15   :  { %1151 = vrot.lane.b32.xlu2 %v1604_v17, %s1688_s22 }
0x1d16   :  { %v1606_v19 = vpop.eup %1605 }
0x1d17   :  { %v1132_v20 = vadd.f32 1.0, %v1606_v19 }
0x1d19   :  { %1607 = vrcp.f32 %v1132_v20  ;;  %v1144_v13 = vand.u32 2147483648, %v1132_v20  ;;  %vm1138_vm3 = vweird.f32 %v1132_v20  ;;  %v1142_v26 = vand.u32 2147483647, %v1132_v20 }
0x1d1b   :  { %v1145_v27 = vor.u32 1.1754944e-38, %v1144_v13  ;;  %vm1143_vm5 = vcmp.eq.f32.partialorder %v1142_v26, 8.507059e+37 }
0x1d1f   :  { %v1608_v21 = vpop.eup %1607 }
0x1d20   :  { %v1134_v22 = vmul.f32 %v1608_v21, %v1132_v20  ;;  %vm1139_vm1 = vweird.f32 %v1608_v21 }
0x1d21   :  { %vm1140_vm4 = vmor %vm1138_vm3, %vm1139_vm1 }
0x1d22   :  { %v1135_v23 = vsub.f32 1.0, %v1134_v22 }
0x1d24   :  { %v1136_v24 = vmul.f32 %v1608_v21, %v1135_v23 }
0x1d26   :  { %v1137_v25 = vadd.f32 %v1608_v21, %v1136_v24 }
0x1d28   :  { %v1141_v14 = vsel %vm1140_vm4, %v1608_v21, %v1137_v25 }
0x1d29   :  { %v1146_v29 = vsel %vm1143_vm5, %v1145_v27, %v1141_v14 }
0x1d2a   :  { %v1149_v31 = vmul.f32 0.0, %v1146_v29 }
0x1d6f   :  { %v1152_v28 = vpop.permute.xlu2 %1151 }
0x1d70   :  { %v1154_v30 = vmul.f32 %v1152_v28, %v1146_v29 }
0x1d72   :  { %1156 = vrot.lane.b32.xlu0 %v1154_v30, %s1689_s4 }
0x1de4   :  { %v1157_v32 = vpop.permute.xlu0 %1156 }
0x1de5   :  { %v1159_v33 = vadd.f32 %v1157_v32, %v1149_v31 }
0x1de7   :  { %1609 = vtanh.f32 %v1159_v33  ;;  %v1218_v58 = vrot.slane %v1159_v33, 7 }
0x1ded   :  { %v1610_v34 = vpop.eup %1609 }
0x1dee   :  { %1162 = vrot.lane.b32.xlu1 %v1610_v34, %s1688_s22 }
0x1e60   :  { %v1163_v35 = vpop.permute.xlu1 %1162 }
0x1e61   :  { %v1165_v36 = vmul.f32 %v1163_v35, %v1146_v29 }
0x1e63   :  { %1167 = vrot.lane.b32.xlu2 %v1165_v36, %s1689_s4 }
0x1ebd   :  { %v1168_v37 = vpop.permute.xlu2 %1167 }
0x1ebe   :  { %1170 = vst.msk [vmem:[#allocation2] sm:$0x1] %vm853_vm14, %v1168_v37  ;;  %1488 = vmatmul.msk.f32.vlgmr.msrb.gmra.mxu2 %vm114_vm6, %v1168_v37 }
0x1f41   :  { %v1190_v38 = vpop.f32.mrf.mxu2 }
0x1f42   :  { %v1194_v39 = vrot.slane %v1190_v38, 7 }
0x1f44   :  { %v1196_v40 = vadd.f32 %v1194_v39, %v2060_v59 }
0x1f46   :  { %1611 = vtanh.f32 %v1196_v40  ;;  %v1489_v42 = vmul.f32 -1.442695, %v1196_v40 }
0x1f48   :  { %1613 = vpow2.f32 %v1489_v42 }
0x1f4c   :  { %v1612_v41 = vpop.eup %1611 }
0x1f4d   :  { %1222 = vrot.lane.b32.xlu0 %v1612_v41, %s1688_s22 }
0x1f4e   :  { %v1614_v43 = vpop.eup %1613 }
0x1f4f   :  { %v1200_v44 = vadd.f32 1.0, %v1614_v43 }
0x1f51   :  { %1615 = vrcp.f32 %v1200_v44  ;;  %v1212_v50 = vand.u32 2147483648, %v1200_v44  ;;  %vm1206_vm7 = vweird.f32 %v1200_v44  ;;  %v1210_v51 = vand.u32 2147483647, %v1200_v44 }
0x1f53   :  { %v1213_v52 = vor.u32 1.1754944e-38, %v1212_v50  ;;  %vm1211_vm0 = vcmp.eq.f32.partialorder %v1210_v51, 8.507059e+37 }
0x1f57   :  { %v1616_v45 = vpop.eup %1615 }
0x1f58   :  { %v1202_v46 = vmul.f32 %v1616_v45, %v1200_v44  ;;  %vm1207_vm14 = vweird.f32 %v1616_v45 }
0x1f59   :  { %vm1208_vm8 = vmor %vm1206_vm7, %vm1207_vm14 }
0x1f5a   :  { %v1203_v47 = vsub.f32 1.0, %v1202_v46 }
0x1f5c   :  { %v1204_v48 = vmul.f32 %v1616_v45, %v1203_v47 }
0x1f5e   :  { %v1205_v49 = vadd.f32 %v1616_v45, %v1204_v48 }
0x1f60   :  { %v1209_v15 = vsel %vm1208_vm8, %v1616_v45, %v1205_v49 }
0x1f61   :  { %v1214_v55 = vsel %vm1211_vm0, %v1213_v52, %v1209_v15 }
0x1f62   :  { %v1220_v60 = vmul.f32 %v1218_v58, %v1214_v55 }
0x1fbf   :  { %v1223_v53 = vpop.permute.xlu0 %1222 }
0x1fc0   :  { %v1225_v57 = vmul.f32 %v1223_v53, %v1214_v55 }
0x1fc2   :  { %1227 = vrot.lane.b32.xlu1 %v1225_v57, %s1689_s4 }
0x2034   :  { %v1228_v6 = vpop.permute.xlu1 %1227 }
0x2035   :  { %v1230_v62 = vadd.f32 %v1228_v6, %v1220_v60 }
0x2037   :  { %1617 = vtanh.f32 %v1230_v62  ;;  %v1292_v25 = vrot.slane %v1230_v62, 7 }
0x203d   :  { %v1618_v63 = vpop.eup %1617 }
0x203e   :  { %1233 = vrot.lane.b32.xlu2 %v1618_v63, %s1688_s22 }
0x2098   :  { %v1234_v0 = vpop.permute.xlu2 %1233 }
0x2099   :  { %v1236_v1 = vmul.f32 %v1234_v0, %v1214_v55 }
0x209b   :  { %v1242_v2 = vrot.slane %v1236_v1, 1 }
0x209d   :  { %1243 = vrot.lane.b32.xlu0 %v1242_v2, %s1689_s4 }
0x210f   :  { %v1244_v3 = vpop.permute.xlu0 %1243 }
0x2110   :  { %1490 = vmatmul.msk.f32.vlgmr.msrb.gmra.mxu3 %vm114_vm6, %v1244_v3 }
0x2193   :  { %v1264_v7 = vpop.f32.mrf.mxu3 }
0x2194   :  { %v1268_v4 = vrot.slane %v1264_v7, 6 }
0x2196   :  { %v1270_v5 = vadd.f32 %v1268_v4, %v2060_v59 }
0x2198   :  { %1619 = vtanh.f32 %v1270_v5  ;;  %v1491_v9 = vmul.f32 -1.442695, %v1270_v5 }
0x219a   :  { %1621 = vpow2.f32 %v1491_v9 }
0x219e   :  { %v1620_v8 = vpop.eup %1619 }
0x219f   :  { %1296 = vrot.lane.b32.xlu1 %v1620_v8, %s1688_s22 }
0x21a0   :  { %v1622_v10 = vpop.eup %1621 }
0x21a1   :  { %v1274_v11 = vadd.f32 1.0, %v1622_v10 }
0x21a3   :  { %1623 = vrcp.f32 %v1274_v11  ;;  %v1286_v18 = vand.u32 2147483648, %v1274_v11  ;;  %vm1280_vm10 = vweird.f32 %v1274_v11  ;;  %v1284_v19 = vand.u32 2147483647, %v1274_v11 }
0x21a5   :  { %v1287_v21 = vor.u32 1.1754944e-38, %v1286_v18  ;;  %vm1285_vm12 = vcmp.eq.f32.partialorder %v1284_v19, 8.507059e+37 }
0x21a9   :  { %v1624_v16 = vpop.eup %1623 }
0x21aa   :  { %v1276_v54 = vmul.f32 %v1624_v16, %v1274_v11  ;;  %vm1281_vm9 = vweird.f32 %v1624_v16 }
0x21ab   :  { %vm1282_vm11 = vmor %vm1280_vm10, %vm1281_vm9 }
0x21ac   :  { %v1277_v56 = vsub.f32 1.0, %v1276_v54 }
0x21ae   :  { %v1278_v61 = vmul.f32 %v1624_v16, %v1277_v56 }
0x21b0   :  { %v1279_v17 = vadd.f32 %v1624_v16, %v1278_v61 }
0x21b2   :  { %v1283_v20 = vsel %vm1282_vm11, %v1624_v16, %v1279_v17 }
0x21b3   :  { %v1288_v23 = vsel %vm1285_vm12, %v1287_v21, %v1283_v20 }
0x21b4   :  { %v1294_v13 = vmul.f32 %v1292_v25, %v1288_v23 }
0x2211   :  { %v1297_v22 = vpop.permute.xlu1 %1296 }
0x2212   :  { %v1299_v24 = vmul.f32 %v1297_v22, %v1288_v23 }
0x2214   :  { %1301 = vrot.lane.b32.xlu2 %v1299_v24, %s1689_s4 }
0x226e   :  { %v1302_v26 = vpop.permute.xlu2 %1301 }
0x226f   :  { %v1304_v14 = vadd.f32 %v1302_v26, %v1294_v13 }
0x2271   :  { %1625 = vtanh.f32 %v1304_v14  ;;  %v1366_v51 = vrot.slane %v1304_v14, 7 }
0x2277   :  { %v1626_v27 = vpop.eup %1625 }
0x2278   :  { %1307 = vrot.lane.b32.xlu0 %v1626_v27, %s1688_s22 }
0x22ea   :  { %v1308_v28 = vpop.permute.xlu0 %1307 }
0x22eb   :  { %v1310_v29 = vmul.f32 %v1308_v28, %v1288_v23 }
0x22ed   :  { %v1316_v30 = vrot.slane %v1310_v29, 2 }
0x22ef   :  { %1317 = vrot.lane.b32.xlu1 %v1316_v30, %s1689_s4 }
0x2361   :  { %v1318_v31 = vpop.permute.xlu1 %1317 }
0x2362   :  { %1492 = vmatmul.msk.f32.vlgmr.msrb.gmra.mxu0 %vm114_vm6, %v1318_v31 }
0x23df   :  { %v1338_v32 = vpop.f32.mrf.mxu0 }
0x23e0   :  { %v1342_v33 = vrot.slane %v1338_v32, 5 }
0x23e2   :  { %v1344_v34 = vadd.f32 %v1342_v33, %v2060_v59 }
0x23e4   :  { %1627 = vtanh.f32 %v1344_v34  ;;  %v1493_v36 = vmul.f32 -1.442695, %v1344_v34 }
0x23e6   :  { %1629 = vpow2.f32 %v1493_v36 }
0x23ea   :  { %v1628_v35 = vpop.eup %1627 }
0x23eb   :  { %1370 = vrot.lane.b32.xlu2 %v1628_v35, %s1688_s22 }
0x23ec   :  { %v1630_v37 = vpop.eup %1629 }
0x23ed   :  { %v1348_v38 = vadd.f32 1.0, %v1630_v37 }
0x23ef   :  { %1631 = vrcp.f32 %v1348_v38  ;;  %v1360_v44 = vand.u32 2147483648, %v1348_v38  ;;  %vm1354_vm3 = vweird.f32 %v1348_v38  ;;  %v1358_v59 = vand.u32 2147483647, %v1348_v38 }
0x23f1   :  { %v1361_v46 = vor.u32 1.1754944e-38, %v1360_v44  ;;  %vm1359_vm5 = vcmp.eq.f32.partialorder %v1358_v59, 8.507059e+37 }
0x23f3   :  { %1238 = vrot.lane.b32.xlu2 %v1236_v1, %s1689_s4 }
0x23f5   :  { %v1632_v39 = vpop.eup %1631 }
0x23f6   :  { %v1350_v40 = vmul.f32 %v1632_v39, %v1348_v38  ;;  %vm1355_vm1 = vweird.f32 %v1632_v39 }
0x23f7   :  { %vm1356_vm4 = vmor %vm1354_vm3, %vm1355_vm1 }
0x23f8   :  { %v1351_v41 = vsub.f32 1.0, %v1350_v40 }
0x23fa   :  { %v1352_v42 = vmul.f32 %v1632_v39, %v1351_v41 }
0x23fc   :  { %v1353_v43 = vadd.f32 %v1632_v39, %v1352_v42 }
0x23fe   :  { %v1357_v45 = vsel %vm1356_vm4, %v1632_v39, %v1353_v43 }
0x23ff   :  { %v1362_v48 = vsel %vm1359_vm5, %v1361_v46, %v1357_v45 }
0x2400   :  { %v1368_v15 = vmul.f32 %v1366_v51, %v1362_v48 }
0x2445   :  { %v1371_v47 = vpop.permute.xlu2 %1370 }
0x2446   :  { %v1373_v49 = vmul.f32 %v1371_v47, %v1362_v48 }
0x2448   :  { %1375 = vrot.lane.b32.xlu0 %v1373_v49, %s1689_s4 }
0x244d   :  { %v1239_v50 = vpop.permute.xlu2 %1238 }
0x244e   :  { %1241 = vst.msk [vmem:[#allocation2] sm:$0x2] %vm925_vm13, %v1239_v50  ;;  %vm1414_vm13 = vcmask 11264  }
0x2450   :  { %1312 = vrot.lane.b32.xlu0 %v1310_v29, %s1689_s4 }
0x24ba   :  { %v1376_v52 = vpop.permute.xlu0 %1375 }
0x24bb   :  { %v1378_v53 = vadd.f32 %v1376_v52, %v1368_v15 }
0x24bd   :  { %1633 = vtanh.f32 %v1378_v53 }
0x24c2   :  { %v1313_v55 = vpop.permute.xlu0 %1312 }
0x24c3   :  { %v1634_v57 = vpop.eup %1633  ;;  %1315 = vst.msk [vmem:[#allocation2] sm:$0x4] %vm1000_vm15, %v1313_v55 }
0x24c4   :  { %1381 = vrot.lane.b32.xlu1 %v1634_v57, %s1688_s22  ;;  %s1691_s22 = smov [#allocation5]  }
0x24c5   :  { %s1434_s25 = sshll.u32 %s1691_s22, 4  ;;  %s1435_s25 = int_to_ptr.vmem [resolvable:$true] %s1434_s25 }
0x2536   :  { %v1382_v58 = vpop.permute.xlu1 %1381 }
0x2537   :  { %v1384_v60 = vmul.f32 %v1382_v58, %v1362_v48 }
0x2539   :  { %1386 = vrot.lane.b32.xlu1 %v1384_v60, %s1689_s4  ;;  %s1436_s4 = sshll.u32 %s2120_s17, 4  ;;  %s1437_s4 = int_to_ptr.hbm [resolvable:$true] %s1436_s4 }
0x253a   :  { %1439 = dma.vmem_to_hbm [thread:$0]  %s1435_s25, 64, %s1437_s4, [#allocation6]  }
0x25ab   :  { %v1387_v6 = vpop.permute.xlu1 %1386 }
0x25ac   :  { %1389 = vst.msk [vmem:[#allocation2] sm:$0x8] %vm1075_vm2, %v1387_v6 }
0x25b3   :  { %v1390_v62 = vld [vmem:[#allocation2] sm:$0xf] }
0x25b4   :  { %1494 = vmatmul.msk.f32.vlgmr.msra.gmra.mxu1 %vm114_vm6, %v1390_v62 }
0x2631   :  { %v1411_v63 = vpop.f32.mrf.mxu1 }
0x2632   :  { %v1412_v0 = vadd.f32 %v2055_v12, %v1411_v63 }
0x2634   :  { %1415 = vst.msk [vmem:[%s2118_s15] sm:$0xf] %vm1414_vm13, %v1412_v0 }
0x2635   :  { %1683 = dma.done.wait [#allocation4], 64  }
0x2636   :  { %1684 = vsyncadd [#allocation4], 4294967232 }
0x2637   :  { %1685 = dma.done.wait [#allocation6], 64  }
0x2638   :  { %1686 = vsyncadd [#allocation6], 4294967232 }
0x2639   :  { %1450 = vsyncpa [#allocation4], 1 }
0x263a   :  { %1451 = vsyncpa [#allocation6], 1 }

</bundles_post_ra>
